<compile_context>
chip_gen: v7x
topology: tpu7x:2x2x1
jax: 0.10.0
libtpu: 0.0.40
codegen_flags: <defaults>
</compile_context>

<pallas_src>
import functools

import jax
import jax.numpy as jnp
from jax.experimental import pallas as pl
from jax.experimental.pallas import tpu as pltpu

HIDDEN_SIZES = [256, 256]
LN_EPS = 1e-5


def _round_up(n, m):
    return ((n + m - 1) // m) * m


def _layernorm_fused(h, gamma, beta):
    # LayerNorm over the last dim, biased variance, eps inside rsqrt
    # (matches torch.nn.LayerNorm defaults). 1/N folded into a static
    # constant multiply instead of a per-reduction divide.
    inv_n = 1.0 / h.shape[-1]
    mu = jnp.sum(h, axis=-1, keepdims=True) * inv_n
    d = h - mu
    var = jnp.sum(d * d, axis=-1, keepdims=True) * inv_n
    return d * jax.lax.rsqrt(var + LN_EPS) * gamma + beta


def mlp_kernel(x_ref,
               w1_ref, b1_ref, g1_ref, be1_ref,
               w2_ref, b2_ref, g2_ref, be2_ref,
               w3_ref, b3_ref,
               o_ref):
    mm_dtype = w1_ref.dtype  # matmul operand dtype (bf16 or f32)

    # Hoist the small broadcast operands: read once per tile.
    b1 = b1_ref[...]
    g1 = g1_ref[...]
    be1 = be1_ref[...]
    b2 = b2_ref[...]
    g2 = g2_ref[...]
    be2 = be2_ref[...]
    b3 = b3_ref[...]

    x = x_ref[...].astype(mm_dtype)  # no-op when upstream already emits bf16

    # Layer 1: Linear -> LayerNorm -> ReLU   (f32 accumulation + f32 stats)
    h = jnp.dot(x, w1_ref[...], preferred_element_type=jnp.float32) + b1
    h = _layernorm_fused(h, g1, be1)
    h = jnp.maximum(h, 0.0)

    # Layer 2: Linear -> LayerNorm -> ReLU
    h = jnp.dot(h.astype(mm_dtype), w2_ref[...],
                preferred_element_type=jnp.float32) + b2
    h = _layernorm_fused(h, g2, be2)
    h = jnp.maximum(h, 0.0)

    # Output layer: Linear -> Sigmoid (lane-dense padded width; valid columns
    # are sliced by the wrapper unless return_padded=True)
    out = jnp.dot(h.astype(mm_dtype), w3_ref[...],
                  preferred_element_type=jnp.float32) + b3
    o_ref[...] = jax.nn.sigmoid(out).astype(o_ref.dtype)


def network_forward(x, params, *, batch_tile=1024,
                    matmul_dtype=jnp.bfloat16,
                    out_dtype=jnp.float32,
                    return_padded=False):
    """x: [B, input_size]. Returns [B, output_size] (or [B, out_pad] if
    return_padded=True so a downstream consumer can fuse the column slice).

    batch_tile: rows per grid step (multiple of 128). Clamped so that the
      batch grid has >= 2 steps whenever B allows (keeps both v7x TensorCores
      busy) and so tiny batches are not padded to a full tile.
    matmul_dtype: operand dtype for the three matmuls (accumulation is f32).
    out_dtype: output element dtype (bfloat16 halves writeback on v5e/v6e).
    """
    (w1, b1, g1, be1, w2, b2, g2, be2, w3, b3) = params
    B, in_size = x.shape
    h1 = w1.shape[1]
    h2 = w2.shape[1]
    out_size = w3.shape[1]

    # --- tile selection ----------------------------------------------------
    batch_tile = max(128, _round_up(int(batch_tile), 128))
    # Ensure >= 2 grid steps when possible (v7x: 2 TCs share the grid), and
    # don't blow tiny batches up to a full default tile.
    two_core_tile = _round_up(max(pl.cdiv(B, 2), 1), 128)
    batch_tile = min(batch_tile, two_core_tile)
    grid = (pl.cdiv(B, batch_tile),)

    # --- lane-dense output slab ---------------------------------------------
    # Pad the final layer to a multiple of 128 columns so the output store is
    # an unmasked, lane-dense vst; the real columns are sliced afterwards.
    out_pad = _round_up(out_size, 128)
    if out_pad != out_size:
        w3 = jnp.pad(w3, ((0, 0), (0, out_pad - out_size)))
        b3 = jnp.pad(b3, ((0, 0), (0, out_pad - out_size)))

    # bf16 matmul operands (f32 accumulation requested in-kernel). Weights are
    # tiny; this one-time cast is constant-folded under jit.
    if matmul_dtype != jnp.float32:
        w1 = w1.astype(matmul_dtype)
        w2 = w2.astype(matmul_dtype)
        w3 = w3.astype(matmul_dtype)

    # --- VMEM budget: only set an explicit limit for very large tiles -------
    bytes_x = jnp.dtype(x.dtype).itemsize
    bytes_mm = jnp.dtype(matmul_dtype).itemsize
    bytes_out = jnp.dtype(out_dtype).itemsize
    vmem_est = (2 * batch_tile * in_size * bytes_x            # x double buffer
                + 2 * batch_tile * out_pad * bytes_out        # out double buffer
                + 2 * (in_size * h1 + h1 * h2 + h2 * out_pad) * bytes_mm  # weights
                + 6 * batch_tile * max(h1, h2) * 4)           # f32 intermediates
    compiler_kwargs = dict(dimension_semantics=("parallel",))
    if vmem_est > 12 * 1024 * 1024:  # would approach v5e's 16 MiB scoped default
        compiler_kwargs["vmem_limit_bytes"] = int(min(2 * vmem_est, 64 * 1024 * 1024))

    def bcast(shape):
        # Constant index map: same block every grid step -> VMEM-resident,
        # Pallas skips the re-DMA across grid iterations.
        return pl.BlockSpec(shape, lambda i: (0, 0))

    # Ragged batch handled by Pallas: the last block's input DMA is clipped to
    # the valid rows (pad rows hold unspecified values, but every op here is
    # row-independent) and the output writeback is masked to the valid rows.
    out_padded = pl.pallas_call(
        mlp_kernel,
        out_shape=jax.ShapeDtypeStruct((B, out_pad), out_dtype),
        grid_spec=pltpu.PrefetchScalarGridSpec(
            num_scalar_prefetch=0,
            grid=grid,
            in_specs=[
                pl.BlockSpec((batch_tile, in_size), lambda i: (i, 0)),  # x
                bcast((in_size, h1)),   # w1
                bcast((1, h1)),         # b1
                bcast((1, h1)),         # gamma1
                bcast((1, h1)),         # beta1
                bcast((h1, h2)),        # w2
                bcast((1, h2)),         # b2
                bcast((1, h2)),         # gamma2
                bcast((1, h2)),         # beta2
                bcast((h2, out_pad)),   # w3 (padded to lane-dense width)
                bcast((1, out_pad)),    # b3
            ],
            out_specs=pl.BlockSpec((batch_tile, out_pad), lambda i: (i, 0)),
        ),
        compiler_params=pltpu.CompilerParams(**compiler_kwargs),
    )(x, w1, b1, g1, be1, w2, b2, g2, be2, w3, b3)

    if return_padded:
        return out_padded
    return out_padded[:, :out_size]


def init_params(key, input_size, output_size, hidden_sizes):
    """Deterministic init mimicking torch.nn.Linear defaults (U[-1/sqrt(fan_in), +])."""
    sizes = [input_size] + list(hidden_sizes) + [output_size]
    params = []
    keys = jax.random.split(key, 2 * (len(sizes) - 1))
    for li in range(len(sizes) - 1):
        fan_in, fan_out = sizes[li], sizes[li + 1]
        bound = 1.0 / jnp.sqrt(jnp.float32(fan_in))
        w = jax.random.uniform(keys[2 * li], (fan_in, fan_out),
                               minval=-bound, maxval=bound, dtype=jnp.float32)
        b = jax.random.uniform(keys[2 * li + 1], (1, fan_out),
                               minval=-bound, maxval=bound, dtype=jnp.float32)
        params.append(w)
        params.append(b)
        if li < len(sizes) - 2:  # LayerNorm after each hidden Linear
            params.append(jnp.ones((1, fan_out), jnp.float32))   # gamma
            params.append(jnp.zeros((1, fan_out), jnp.float32))  # beta
    return tuple(params)


def _layernorm_ref(h, gamma, beta):
    mu = jnp.mean(h, axis=-1, keepdims=True)
    var = jnp.mean(jnp.square(h - mu), axis=-1, keepdims=True)
    return (h - mu) * jax.lax.rsqrt(var + LN_EPS) * gamma + beta


def reference_forward(x, params):
    """Pure-JAX f32 reference of the same forward pass."""
    (w1, b1, g1, be1, w2, b2, g2, be2, w3, b3) = params
    h = x @ w1 + b1
    h = _layernorm_ref(h, g1, be1)
    h = jnp.maximum(h, 0.0)
    h = h @ w2 + b2
    h = _layernorm_ref(h, g2, be2)
    h = jnp.maximum(h, 0.0)
    return jax.nn.sigmoid(h @ w3 + b3)


if __name__ == "__main__":
    key = jax.random.PRNGKey(0)
    k_x, k_p, k_x2 = jax.random.split(key, 3)

    batch = 8
    input_size = 32
    output_size = 8

    x = jax.random.normal(k_x, (batch, input_size), dtype=jnp.float32)
    params = init_params(k_p, input_size, output_size, HIDDEN_SIZES)
    ref = reference_forward(x, params)

    # 1) Exact-semantics check: f32 matmul operands, tight tolerance.
    fwd_f32 = jax.jit(functools.partial(network_forward,
                                        matmul_dtype=jnp.float32))
    out_f32 = jax.block_until_ready(fwd_f32(x, params))
    assert out_f32.shape == (batch, output_size)
    assert jnp.allclose(out_f32, ref, atol=1e-5, rtol=1e-5)

    # 2) Default fast path: bf16 matmul operands, f32 accumulation/stats.
    fwd = jax.jit(functools.partial(network_forward))
    out = jax.block_until_ready(fwd(x, params))
    assert out.shape == (batch, output_size)
    assert jnp.allclose(out, ref, atol=3e-2, rtol=3e-2)

    # 3) Ragged batch (non-multiple of the tile) + bf16 output writeback:
    #    exercises the masked last block and the two-step grid.
    batch2 = 300
    x2 = jax.random.normal(k_x2, (batch2, input_size), dtype=jnp.float32)
    ref2 = reference_forward(x2, params)
    fwd_bf16out = jax.jit(functools.partial(network_forward,
                                            out_dtype=jnp.bfloat16))
    out2 = jax.block_until_ready(fwd_bf16out(x2, params))
    assert out2.shape == (batch2, output_size)
    assert jnp.allclose(out2.astype(jnp.float32), ref2, atol=3e-2, rtol=3e-2)
    assert bool(jnp.all(jnp.isfinite(out2.astype(jnp.float32))))

    print("KERNEL_OK")
</pallas_src>

<mosaic_0001>
module attributes {stable_mosaic.version = 11 : i64} {
  func.func @mlp_kernel(%arg0: i32, %arg1: memref<128x32xf32, #tpu.memory_space<vmem>>, %arg2: memref<32x256xf32, #tpu.memory_space<vmem>>, %arg3: memref<1x256xf32, #tpu.memory_space<vmem>>, %arg4: memref<1x256xf32, #tpu.memory_space<vmem>>, %arg5: memref<1x256xf32, #tpu.memory_space<vmem>>, %arg6: memref<256x256xf32, #tpu.memory_space<vmem>>, %arg7: memref<1x256xf32, #tpu.memory_space<vmem>>, %arg8: memref<1x256xf32, #tpu.memory_space<vmem>>, %arg9: memref<1x256xf32, #tpu.memory_space<vmem>>, %arg10: memref<256x128xf32, #tpu.memory_space<vmem>>, %arg11: memref<1x128xf32, #tpu.memory_space<vmem>>, %arg12: memref<128x128xf32, #tpu.memory_space<vmem>>) attributes {dimension_semantics = [#tpu.dimension_semantics<parallel>], iteration_bounds = array<i64: 1>, scalar_prefetch = 0 : i64, scratch_operands = 0 : i64, tpu.core_type = #tpu.core_type<tc>, window_params = [{transform_indices = @transform_0, window_bounds = array<i64: 128, 32>}, {pipeline_mode = #tpu.pipeline_mode<synchronous>, transform_indices = @transform_1, window_bounds = array<i64: 32, 256>}, {pipeline_mode = #tpu.pipeline_mode<synchronous>, transform_indices = @transform_2, window_bounds = array<i64: 1, 256>}, {pipeline_mode = #tpu.pipeline_mode<synchronous>, transform_indices = @transform_3, window_bounds = array<i64: 1, 256>}, {pipeline_mode = #tpu.pipeline_mode<synchronous>, transform_indices = @transform_4, window_bounds = array<i64: 1, 256>}, {pipeline_mode = #tpu.pipeline_mode<synchronous>, transform_indices = @transform_5, window_bounds = array<i64: 256, 256>}, {pipeline_mode = #tpu.pipeline_mode<synchronous>, transform_indices = @transform_6, window_bounds = array<i64: 1, 256>}, {pipeline_mode = #tpu.pipeline_mode<synchronous>, transform_indices = @transform_7, window_bounds = array<i64: 1, 256>}, {pipeline_mode = #tpu.pipeline_mode<synchronous>, transform_indices = @transform_8, window_bounds = array<i64: 1, 256>}, {pipeline_mode = #tpu.pipeline_mode<synchronous>, transform_indices = @transform_9, window_bounds = array<i64: 256, 128>}, {pipeline_mode = #tpu.pipeline_mode<synchronous>, transform_indices = @transform_10, window_bounds = array<i64: 1, 128>}, {transform_indices = @transform_11, window_bounds = array<i64: 128, 128>}]} {
    %c0 = arith.constant 0 : index
    %c0_0 = arith.constant 0 : index
    %0 = vector.load %arg3[%c0, %c0_0] : memref<1x256xf32, #tpu.memory_space<vmem>>, vector<1x256xf32>
    %c0_1 = arith.constant 0 : index
    %c0_2 = arith.constant 0 : index
    %1 = vector.load %arg4[%c0_1, %c0_2] : memref<1x256xf32, #tpu.memory_space<vmem>>, vector<1x256xf32>
    %c0_3 = arith.constant 0 : index
    %c0_4 = arith.constant 0 : index
    %2 = vector.load %arg5[%c0_3, %c0_4] : memref<1x256xf32, #tpu.memory_space<vmem>>, vector<1x256xf32>
    %c0_5 = arith.constant 0 : index
    %c0_6 = arith.constant 0 : index
    %3 = vector.load %arg7[%c0_5, %c0_6] : memref<1x256xf32, #tpu.memory_space<vmem>>, vector<1x256xf32>
    %c0_7 = arith.constant 0 : index
    %c0_8 = arith.constant 0 : index
    %4 = vector.load %arg8[%c0_7, %c0_8] : memref<1x256xf32, #tpu.memory_space<vmem>>, vector<1x256xf32>
    %c0_9 = arith.constant 0 : index
    %c0_10 = arith.constant 0 : index
    %5 = vector.load %arg9[%c0_9, %c0_10] : memref<1x256xf32, #tpu.memory_space<vmem>>, vector<1x256xf32>
    %c0_11 = arith.constant 0 : index
    %c0_12 = arith.constant 0 : index
    %6 = vector.load %arg11[%c0_11, %c0_12] : memref<1x128xf32, #tpu.memory_space<vmem>>, vector<1x128xf32>
    %c0_13 = arith.constant 0 : index
    %c0_14 = arith.constant 0 : index
    %7 = vector.load %arg1[%c0_13, %c0_14] : memref<128x32xf32, #tpu.memory_space<vmem>>, vector<128x32xf32>
    %c0_15 = arith.constant 0 : index
    %c0_16 = arith.constant 0 : index
    %8 = vector.load %arg2[%c0_15, %c0_16] : memref<32x256xf32, #tpu.memory_space<vmem>>, vector<32x256xf32>
    %cst = arith.constant dense<0.000000e+00> : vector<128x256xf32>
    %9 = tpu.matmul %7, %8, %cst {dimension_numbers = #tpu.dot_dimension_numbers<[1], [0], [0], [1], [0, 0, 1, 1], [], []>} : vector<128x32xf32>, vector<32x256xf32>, vector<128x256xf32> -> vector<128x256xf32>
    %10 = vector.broadcast %0 : vector<1x256xf32> to vector<128x256xf32>
    %11 = arith.addf %9, %10 : vector<128x256xf32>
    %cst_17 = arith.constant dense<0.000000e+00> : vector<128xf32>
    %12 = vector.multi_reduction <add>, %11, %cst_17 [1] : vector<128x256xf32> to vector<128xf32>
    %13 = vector.shape_cast %12 : vector<128xf32> to vector<128x1xf32>
    %cst_18 = arith.constant 3.906250e-03 : f32
    %14 = vector.broadcast %cst_18 : f32 to vector<128x1xf32>
    %15 = arith.mulf %13, %14 : vector<128x1xf32>
    %16 = vector.broadcast %15 : vector<128x1xf32> to vector<128x256xf32>
    %17 = arith.subf %11, %16 : vector<128x256xf32>
    %18 = arith.mulf %17, %17 : vector<128x256xf32>
    %cst_19 = arith.constant dense<0.000000e+00> : vector<128xf32>
    %19 = vector.multi_reduction <add>, %18, %cst_19 [1] : vector<128x256xf32> to vector<128xf32>
    %20 = vector.shape_cast %19 : vector<128xf32> to vector<128x1xf32>
    %cst_20 = arith.constant 3.906250e-03 : f32
    %21 = vector.broadcast %cst_20 : f32 to vector<128x1xf32>
    %22 = arith.mulf %20, %21 : vector<128x1xf32>
    %cst_21 = arith.constant 9.99999974E-6 : f32
    %23 = vector.broadcast %cst_21 : f32 to vector<128x1xf32>
    %24 = arith.addf %22, %23 : vector<128x1xf32>
    %25 = math.rsqrt %24 : vector<128x1xf32>
    %26 = vector.broadcast %25 : vector<128x1xf32> to vector<128x256xf32>
    %27 = arith.mulf %17, %26 : vector<128x256xf32>
    %28 = vector.broadcast %1 : vector<1x256xf32> to vector<128x256xf32>
    %29 = arith.mulf %27, %28 : vector<128x256xf32>
    %30 = vector.broadcast %2 : vector<1x256xf32> to vector<128x256xf32>
    %31 = arith.addf %29, %30 : vector<128x256xf32>
    %cst_22 = arith.constant 0.000000e+00 : f32
    %32 = vector.broadcast %cst_22 : f32 to vector<128x256xf32>
    %33 = arith.maximumf %31, %32 : vector<128x256xf32>
    %c0_23 = arith.constant 0 : index
    %c0_24 = arith.constant 0 : index
    %34 = vector.load %arg6[%c0_23, %c0_24] : memref<256x256xf32, #tpu.memory_space<vmem>>, vector<256x256xf32>
    %cst_25 = arith.constant dense<0.000000e+00> : vector<128x256xf32>
    %35 = tpu.matmul %33, %34, %cst_25 {dimension_numbers = #tpu.dot_dimension_numbers<[1], [0], [0], [1], [0, 0, 1, 1], [], []>} : vector<128x256xf32>, vector<256x256xf32>, vector<128x256xf32> -> vector<128x256xf32>
    %36 = vector.broadcast %3 : vector<1x256xf32> to vector<128x256xf32>
    %37 = arith.addf %35, %36 : vector<128x256xf32>
    %cst_26 = arith.constant dense<0.000000e+00> : vector<128xf32>
    %38 = vector.multi_reduction <add>, %37, %cst_26 [1] : vector<128x256xf32> to vector<128xf32>
    %39 = vector.shape_cast %38 : vector<128xf32> to vector<128x1xf32>
    %cst_27 = arith.constant 3.906250e-03 : f32
    %40 = vector.broadcast %cst_27 : f32 to vector<128x1xf32>
    %41 = arith.mulf %39, %40 : vector<128x1xf32>
    %42 = vector.broadcast %41 : vector<128x1xf32> to vector<128x256xf32>
    %43 = arith.subf %37, %42 : vector<128x256xf32>
    %44 = arith.mulf %43, %43 : vector<128x256xf32>
    %cst_28 = arith.constant dense<0.000000e+00> : vector<128xf32>
    %45 = vector.multi_reduction <add>, %44, %cst_28 [1] : vector<128x256xf32> to vector<128xf32>
    %46 = vector.shape_cast %45 : vector<128xf32> to vector<128x1xf32>
    %cst_29 = arith.constant 3.906250e-03 : f32
    %47 = vector.broadcast %cst_29 : f32 to vector<128x1xf32>
    %48 = arith.mulf %46, %47 : vector<128x1xf32>
    %cst_30 = arith.constant 9.99999974E-6 : f32
    %49 = vector.broadcast %cst_30 : f32 to vector<128x1xf32>
    %50 = arith.addf %48, %49 : vector<128x1xf32>
    %51 = math.rsqrt %50 : vector<128x1xf32>
    %52 = vector.broadcast %51 : vector<128x1xf32> to vector<128x256xf32>
    %53 = arith.mulf %43, %52 : vector<128x256xf32>
    %54 = vector.broadcast %4 : vector<1x256xf32> to vector<128x256xf32>
    %55 = arith.mulf %53, %54 : vector<128x256xf32>
    %56 = vector.broadcast %5 : vector<1x256xf32> to vector<128x256xf32>
    %57 = arith.addf %55, %56 : vector<128x256xf32>
    %cst_31 = arith.constant 0.000000e+00 : f32
    %58 = vector.broadcast %cst_31 : f32 to vector<128x256xf32>
    %59 = arith.maximumf %57, %58 : vector<128x256xf32>
    %c0_32 = arith.constant 0 : index
    %c0_33 = arith.constant 0 : index
    %60 = vector.load %arg10[%c0_32, %c0_33] : memref<256x128xf32, #tpu.memory_space<vmem>>, vector<256x128xf32>
    %cst_34 = arith.constant dense<0.000000e+00> : vector<128x128xf32>
    %61 = tpu.matmul %59, %60, %cst_34 {dimension_numbers = #tpu.dot_dimension_numbers<[1], [0], [0], [1], [0, 0, 1, 1], [], []>} : vector<128x256xf32>, vector<256x128xf32>, vector<128x128xf32> -> vector<128x128xf32>
    %62 = vector.broadcast %6 : vector<1x128xf32> to vector<128x128xf32>
    %63 = arith.addf %61, %62 : vector<128x128xf32>
    %64 = arith.negf %63 : vector<128x128xf32>
    %65 = math.exp %64 : vector<128x128xf32>
    %cst_35 = arith.constant 1.000000e+00 : f32
    %66 = vector.broadcast %cst_35 : f32 to vector<128x128xf32>
    %67 = arith.addf %66, %65 : vector<128x128xf32>
    %68 = arith.divf %66, %67 : vector<128x128xf32>
    %c0_36 = arith.constant 0 : index
    %c0_37 = arith.constant 0 : index
    %69 = vector.load %arg12[%c0_36, %c0_37] : memref<128x128xf32, #tpu.memory_space<vmem>>, vector<128x128xf32>
    tpu.vector_store %arg12[%c0_36, %c0_37], %68 {strides = array<i32>} : memref<128x128xf32, #tpu.memory_space<vmem>>, vector<128x128xf32>,
    return
  }
  func.func @transform_0(%arg0: i32) -> (i32, i32) {
    %c0_i32 = arith.constant 0 : i32
    %c0_i32_0 = arith.constant 0 : i32
    return %arg0, %c0_i32 : i32, i32
  }
  func.func @transform_1(%arg0: i32) -> (i32, i32) {
    %c0_i32 = arith.constant 0 : i32
    %c0_i32_0 = arith.constant 0 : i32
    %c0_i32_1 = arith.constant 0 : i32
    return %c0_i32, %c0_i32_0 : i32, i32
  }
  func.func @transform_2(%arg0: i32) -> (i32, i32) {
    %c0_i32 = arith.constant 0 : i32
    %c0_i32_0 = arith.constant 0 : i32
    %c0_i32_1 = arith.constant 0 : i32
    return %c0_i32, %c0_i32_0 : i32, i32
  }
  func.func @transform_3(%arg0: i32) -> (i32, i32) {
    %c0_i32 = arith.constant 0 : i32
    %c0_i32_0 = arith.constant 0 : i32
    %c0_i32_1 = arith.constant 0 : i32
    return %c0_i32, %c0_i32_0 : i32, i32
  }
  func.func @transform_4(%arg0: i32) -> (i32, i32) {
    %c0_i32 = arith.constant 0 : i32
    %c0_i32_0 = arith.constant 0 : i32
    %c0_i32_1 = arith.constant 0 : i32
    return %c0_i32, %c0_i32_0 : i32, i32
  }
  func.func @transform_5(%arg0: i32) -> (i32, i32) {
    %c0_i32 = arith.constant 0 : i32
    %c0_i32_0 = arith.constant 0 : i32
    %c0_i32_1 = arith.constant 0 : i32
    return %c0_i32, %c0_i32_0 : i32, i32
  }
  func.func @transform_6(%arg0: i32) -> (i32, i32) {
    %c0_i32 = arith.constant 0 : i32
    %c0_i32_0 = arith.constant 0 : i32
    %c0_i32_1 = arith.constant 0 : i32
    return %c0_i32, %c0_i32_0 : i32, i32
  }
  func.func @transform_7(%arg0: i32) -> (i32, i32) {
    %c0_i32 = arith.constant 0 : i32
    %c0_i32_0 = arith.constant 0 : i32
    %c0_i32_1 = arith.constant 0 : i32
    return %c0_i32, %c0_i32_0 : i32, i32
  }
  func.func @transform_8(%arg0: i32) -> (i32, i32) {
    %c0_i32 = arith.constant 0 : i32
    %c0_i32_0 = arith.constant 0 : i32
    %c0_i32_1 = arith.constant 0 : i32
    return %c0_i32, %c0_i32_0 : i32, i32
  }
  func.func @transform_9(%arg0: i32) -> (i32, i32) {
    %c0_i32 = arith.constant 0 : i32
    %c0_i32_0 = arith.constant 0 : i32
    %c0_i32_1 = arith.constant 0 : i32
    return %c0_i32, %c0_i32_0 : i32, i32
  }
  func.func @transform_10(%arg0: i32) -> (i32, i32) {
    %c0_i32 = arith.constant 0 : i32
    %c0_i32_0 = arith.constant 0 : i32
    %c0_i32_1 = arith.constant 0 : i32
    return %c0_i32, %c0_i32_0 : i32, i32
  }
  func.func @transform_11(%arg0: i32) -> (i32, i32) {
    %c0_i32 = arith.constant 0 : i32
    %c0_i32_0 = arith.constant 0 : i32
    return %arg0, %c0_i32 : i32, i32
  }
}

</mosaic_0001>

<bundles_post_ra>
// kernel: network_forward.1
= control target key start
LH: loop header
LB: loop body
LE: loop exit
PB: predicated region body
PF: predicated region fallthrough
CT: control target
= control target key end

     0   :  { %16 = vsyncpa [#allocation3], 0  ;;  %v1975_v6 = vmov 0.0   ;;  %vm81_vm0 = vcmask 261120   ;;  %v71_v29 = vlaneseq  ;;  %s3274_s0 = inlined_call_operand.vmem [shape: f32[8,32], index: 0, kind: input, shape index: {}]   ;;  %s3275_s1 = inlined_call_operand.vmem [shape: f32[32,256], index: 1, kind: input, shape index: {}]   ;;  %s3276_s2 = inlined_call_operand.vmem [shape: f32[1,256], index: 2, kind: input, shape index: {}]   ;;  %s3277_s3 = inlined_call_operand.vmem [shape: f32[1,256], index: 3, kind: input, shape index: {}]   ;;  %s3278_s4 = inlined_call_operand.vmem [shape: f32[1,256], index: 4, kind: input, shape index: {}]   ;;  %s3279_s5 = inlined_call_operand.vmem [shape: f32[256,256], index: 5, kind: input, shape index: {}]   ;;  %s3280_s6 = inlined_call_operand.vmem [shape: f32[1,256], index: 6, kind: input, shape index: {}]   ;;  %s3281_s7 = inlined_call_operand.vmem [shape: f32[1,256], index: 7, kind: input, shape index: {}]   ;;  %s3282_s8 = inlined_call_operand.vmem [shape: f32[1,256], index: 8, kind: input, shape index: {}]   ;;  %s3283_s9 = inlined_call_operand.vmem [shape: f32[256,128], index: 9, kind: input, shape index: {}]   ;;  %s3284_s10 = inlined_call_operand.vmem [shape: f32[1,128], index: 10, kind: input, shape index: {}]   ;;  %s3285_s11 = inlined_call_operand.hbm [shape: f32[8,128], index: 11, kind: output, shape index: {}]  }
   0x1   :  { %v63_v0 = vld [vmem:[%s3275_s1 + $0x8] sm:$0xff]  ;;  %v65_v1 = vld [vmem:[%s3275_s1 + $0x18] sm:$0xff]  ;;  %v62_v3 = vld [vmem:[%s3275_s1] sm:$0xff]  ;;  %194 = vmatprep.mubr.f32.mxu0 %v1975_v6 }
   0x2   :  { %v1699_v2 = vpack.c.bf16 %v65_v1, %v63_v0  ;;  %v64_v4 = vld [vmem:[%s3275_s1 + $0x10] sm:$0xff]  ;;  %v67_v5 = vld [vmem:[%s3275_s1 + $0x28] sm:$0xff]  ;;  %v69_v8 = vld [vmem:[%s3275_s1 + $0x38] sm:$0xff]  ;;  %v72_v30 = vshrl.u32 %v71_v29, 7 }
   0x3   :  { %v1701_v7 = vpack.c.bf16 %v64_v4, %v62_v3  ;;  %v66_v9 = vld [vmem:[%s3275_s1 + $0x20] sm:$0xff]  ;;  %v68_v10 = vld [vmem:[%s3275_s1 + $0x30] sm:$0xff]  ;;  %v1703_v11 = vpack.c.bf16 %v69_v8, %v67_v5  ;;  %v47_v14 = vld [vmem:[%s3274_s0 + $0x8] sm:$0xff] }
   0x4   :  { %1700 = vmatprep.subr.bf16.mxu0 %v1699_v2  ;;  %v1705_v12 = vpack.c.bf16 %v68_v10, %v66_v9  ;;  %v46_v13 = vld [vmem:[%s3274_s0] sm:$0xff]  ;;  %v48_v15 = vld [vmem:[%s3274_s0 + $0x10] sm:$0xff]  ;;  %v49_v16 = vld [vmem:[%s3274_s0 + $0x18] sm:$0xff]  ;;  %v2127_v31 = vsub.s32 0, %v72_v30  ;;  %v2132_v33 = vsub.s32 1, %v72_v30 }
   0x5   :  { %1702 = vmatpush1.bf16.msra.mxu0 %v1701_v7  ;;  %v50_v17 = vld [vmem:[%s3274_s0 + $0x20] sm:$0xff]  ;;  %v51_v18 = vld [vmem:[%s3274_s0 + $0x28] sm:$0xff]  ;;  %v52_v19 = vld [vmem:[%s3274_s0 + $0x30] sm:$0xff] }
   0x6   :  { %1704 = vmatprep.subr.bf16.mxu0 %v1703_v11  ;;  %v53_v20 = vld [vmem:[%s3274_s0 + $0x38] sm:$0xff]  ;;  %v54_v21 = vld [vmem:[%s3274_s0 + $0x40] sm:$0xff]  ;;  %v55_v22 = vld [vmem:[%s3274_s0 + $0x48] sm:$0xff] }
   0x7   :  { %v56_v23 = vld [vmem:[%s3274_s0 + $0x50] sm:$0xff]  ;;  %v57_v24 = vld [vmem:[%s3274_s0 + $0x58] sm:$0xff]  ;;  %v58_v25 = vld [vmem:[%s3274_s0 + $0x60] sm:$0xff] }
   0x8   :  { %v59_v26 = vld [vmem:[%s3274_s0 + $0x68] sm:$0xff]  ;;  %v60_v27 = vld [vmem:[%s3274_s0 + $0x70] sm:$0xff]  ;;  %v61_v28 = vld [vmem:[%s3274_s0 + $0x78] sm:$0xff] }
   0x9   :  { %1706 = vmatpush1.bf16.msra.mxu0 %v1705_v12  ;;  %v39_v32 = vld [vmem:[%s3276_s2] sm:$0x3] }
   0xa   :  { %v2135_v34 = vrot.slane %v39_v32, %v2127_v31  ;;  %v2138_v35 = vrot.slane %v39_v32, %v2132_v33 }
   0xc   :  { %1586 = vmatmul.mubr.msk.f32.vlgmr.msra.gmra.mrb[0].mxu0 %vm81_vm0, %v46_v13 }
   0xd   :  { %200 = vmatprep.mubr.f32.mxu0 %v1975_v6 }
  0x10   :  { %1587 = vmatmul.mubr.msk.f32.gmra.mrb[2].mxu0 %vm81_vm0, %v47_v14 }
  0x11   :  { %206 = vmatprep.mubr.f32.mxu0 %v1975_v6 }
  0x14   :  { %1588 = vmatmul.mubr.msk.f32.gmra.mrb[4].mxu0 %vm81_vm0, %v48_v15 }
  0x15   :  { %212 = vmatprep.mubr.f32.mxu0 %v1975_v6 }
  0x18   :  { %1589 = vmatmul.mubr.msk.f32.gmra.mrb[6].mxu0 %vm81_vm0, %v49_v16 }
  0x19   :  { %218 = vmatprep.mubr.f32.mxu0 %v1975_v6 }
  0x1c   :  { %1590 = vmatmul.mubr.msk.f32.gmra.mrb[8].mxu0 %vm81_vm0, %v50_v17 }
  0x1d   :  { %224 = vmatprep.mubr.f32.mxu0 %v1975_v6 }
  0x20   :  { %1591 = vmatmul.mubr.msk.f32.gmra.mrb[10].mxu0 %vm81_vm0, %v51_v18 }
  0x21   :  { %230 = vmatprep.mubr.f32.mxu0 %v1975_v6 }
  0x24   :  { %1592 = vmatmul.mubr.msk.f32.gmra.mrb[12].mxu0 %vm81_vm0, %v52_v19 }
  0x25   :  { %236 = vmatprep.mubr.f32.mxu0 %v1975_v6 }
  0x28   :  { %1593 = vmatmul.mubr.msk.f32.gmra.mrb[14].mxu0 %vm81_vm0, %v53_v20 }
  0x29   :  { %242 = vmatprep.mubr.f32.mxu0 %v1975_v6 }
  0x2c   :  { %1594 = vmatmul.mubr.msk.f32.gmra.mrb[16].mxu0 %vm81_vm0, %v54_v21 }
  0x2d   :  { %248 = vmatprep.mubr.f32.mxu0 %v1975_v6 }
  0x30   :  { %1595 = vmatmul.mubr.msk.f32.gmra.mrb[18].mxu0 %vm81_vm0, %v55_v22 }
  0x31   :  { %254 = vmatprep.mubr.f32.mxu0 %v1975_v6 }
  0x34   :  { %1596 = vmatmul.mubr.msk.f32.gmra.mrb[20].mxu0 %vm81_vm0, %v56_v23 }
  0x35   :  { %260 = vmatprep.mubr.f32.mxu0 %v1975_v6 }
  0x38   :  { %1597 = vmatmul.mubr.msk.f32.gmra.mrb[22].mxu0 %vm81_vm0, %v57_v24 }
  0x39   :  { %266 = vmatprep.mubr.f32.mxu0 %v1975_v6 }
  0x3c   :  { %1598 = vmatmul.mubr.msk.f32.gmra.mrb[24].mxu0 %vm81_vm0, %v58_v25 }
  0x3d   :  { %272 = vmatprep.mubr.f32.mxu0 %v1975_v6 }
  0x40   :  { %1599 = vmatmul.mubr.msk.f32.gmra.mrb[26].mxu0 %vm81_vm0, %v59_v26 }
  0x41   :  { %278 = vmatprep.mubr.f32.mxu0 %v1975_v6 }
  0x44   :  { %1600 = vmatmul.mubr.msk.f32.gmra.mrb[28].mxu0 %vm81_vm0, %v60_v27 }
  0x45   :  { %284 = vmatprep.mubr.f32.mxu0 %v1975_v6 }
  0x48   :  { %1601 = vmatmul.mubr.msk.f32.gmra.mrb[30].mxu0 %vm81_vm0, %v61_v28 }
  0xdf   :  { %v196_v36 = vpop.f32.mrb[0].mxu0 }
  0xe0   :  { %v2141_v37 = vadd.f32 %v196_v36, %v2135_v34  ;;  %v198_v38 = vpop.f32.mrb[1].mxu0 }
  0xe1   :  { %v2144_v39 = vadd.f32 %v198_v38, %v2138_v35 }
  0xe3   :  { %v202_v40 = vpop.f32.mrb[2].mxu0  ;;  %v291_v41 = vadd.f32 %v2144_v39, %v2141_v37 }
  0xe4   :  { %v2149_v42 = vadd.f32 %v202_v40, %v2135_v34  ;;  %v204_v43 = vpop.f32.mrb[3].mxu0 }
  0xe5   :  { %v2152_v44 = vadd.f32 %v204_v43, %v2138_v35  ;;  %292 = vadd.xlane.f32.xlu0 %v291_v41 }
  0xe7   :  { %v208_v45 = vpop.f32.mrb[4].mxu0  ;;  %v294_v46 = vadd.f32 %v2152_v44, %v2149_v42 }
  0xe8   :  { %v2157_v47 = vadd.f32 %v208_v45, %v2135_v34  ;;  %v210_v48 = vpop.f32.mrb[5].mxu0 }
  0xe9   :  { %v2160_v49 = vadd.f32 %v210_v48, %v2138_v35  ;;  %295 = vadd.xlane.f32.xlu0 %v294_v46 }
  0xeb   :  { %v214_v50 = vpop.f32.mrb[6].mxu0  ;;  %v297_v51 = vadd.f32 %v2160_v49, %v2157_v47 }
  0xec   :  { %v2165_v52 = vadd.f32 %v214_v50, %v2135_v34  ;;  %v216_v53 = vpop.f32.mrb[7].mxu0 }
  0xed   :  { %v2168_v54 = vadd.f32 %v216_v53, %v2138_v35  ;;  %298 = vadd.xlane.f32.xlu1 %v297_v51 }
  0xef   :  { %v220_v55 = vpop.f32.mrb[8].mxu0  ;;  %v300_v56 = vadd.f32 %v2168_v54, %v2165_v52 }
  0xf0   :  { %v2173_v57 = vadd.f32 %v220_v55, %v2135_v34  ;;  %v222_v58 = vpop.f32.mrb[9].mxu0 }
  0xf1   :  { %v2176_v59 = vadd.f32 %v222_v58, %v2138_v35  ;;  %301 = vadd.xlane.f32.xlu1 %v300_v56 }
  0xf3   :  { %v226_v60 = vpop.f32.mrb[10].mxu0  ;;  %v303_v61 = vadd.f32 %v2176_v59, %v2173_v57 }
  0xf4   :  { %v2181_v62 = vadd.f32 %v226_v60, %v2135_v34  ;;  %v228_v63 = vpop.f32.mrb[11].mxu0 }
  0xf5   :  { %v2184_v0 = vadd.f32 %v228_v63, %v2138_v35  ;;  %304 = vadd.xlane.f32.xlu0 %v303_v61 }
  0xf7   :  { %v232_v1 = vpop.f32.mrb[12].mxu0  ;;  %v306_v2 = vadd.f32 %v2184_v0, %v2181_v62 }
  0xf8   :  { %v2189_v3 = vadd.f32 %v232_v1, %v2135_v34  ;;  %v234_v4 = vpop.f32.mrb[13].mxu0 }
  0xf9   :  { %v2192_v5 = vadd.f32 %v234_v4, %v2138_v35  ;;  %307 = vadd.xlane.f32.xlu1 %v306_v2 }
  0xfb   :  { %v238_v6 = vpop.f32.mrb[14].mxu0  ;;  %v309_v7 = vadd.f32 %v2192_v5, %v2189_v3 }
  0xfc   :  { %v2197_v8 = vadd.f32 %v238_v6, %v2135_v34  ;;  %v240_v9 = vpop.f32.mrb[15].mxu0  ;;  %v666_v6 = vld [vmem:[%s3279_s5 + $0x8] sm:$0xff] }
  0xfd   :  { %v2200_v10 = vadd.f32 %v240_v9, %v2138_v35  ;;  %310 = vadd.xlane.f32.xlu0 %v309_v7  ;;  %v668_v7 = vld [vmem:[%s3279_s5 + $0x18] sm:$0xff] }
  0xfe   :  { %v1707_v9 = vpack.c.bf16 %v668_v7, %v666_v6  ;;  %v688_v6 = vld [vmem:[%s3279_s5 + $0xb8] sm:$0xff] }
  0xff   :  { %v244_v11 = vpop.f32.mrb[16].mxu0  ;;  %v312_v12 = vadd.f32 %v2200_v10, %v2197_v8 }
 0x100   :  { %v2205_v13 = vadd.f32 %v244_v11, %v2135_v34  ;;  %v246_v14 = vpop.f32.mrb[17].mxu0  ;;  %v670_v11 = vld [vmem:[%s3279_s5 + $0x28] sm:$0xff]  ;;  %1708 = vmatprep.subr.bf16.mxu1 %v1707_v9  ;;  %v685_v9 = vld [vmem:[%s3279_s5 + $0xa0] sm:$0xff] }
 0x101   :  { %v2208_v15 = vadd.f32 %v246_v14, %v2138_v35  ;;  %313 = vadd.xlane.f32.xlu1 %v312_v12  ;;  %v672_v12 = vld [vmem:[%s3279_s5 + $0x38] sm:$0xff] }
 0x103   :  { %v250_v16 = vpop.f32.mrb[18].mxu0  ;;  %v315_v17 = vadd.f32 %v2208_v15, %v2205_v13 }
 0x104   :  { %v2213_v18 = vadd.f32 %v250_v16, %v2135_v34  ;;  %v252_v19 = vpop.f32.mrb[19].mxu0  ;;  %v1711_v16 = vpack.c.bf16 %v672_v12, %v670_v11  ;;  %v690_v11 = vld [vmem:[%s3279_s5 + $0xc8] sm:$0xff]  ;;  %v692_v12 = vld [vmem:[%s3279_s5 + $0xd8] sm:$0xff] }
 0x105   :  { %v2216_v20 = vadd.f32 %v252_v19, %v2138_v35  ;;  %316 = vadd.xlane.f32.xlu0 %v315_v17  ;;  %v669_v17 = vld [vmem:[%s3279_s5 + $0x20] sm:$0xff]  ;;  %v671_v19 = vld [vmem:[%s3279_s5 + $0x30] sm:$0xff] }
 0x107   :  { %v256_v21 = vpop.f32.mrb[20].mxu0  ;;  %v318_v22 = vadd.f32 %v2216_v20, %v2213_v18 }
 0x108   :  { %v2221_v23 = vadd.f32 %v256_v21, %v2135_v34  ;;  %v258_v24 = vpop.f32.mrb[21].mxu0  ;;  %v674_v21 = vld [vmem:[%s3279_s5 + $0x48] sm:$0xff] }
 0x109   :  { %v2224_v25 = vadd.f32 %v258_v24, %v2138_v35  ;;  %319 = vadd.xlane.f32.xlu1 %v318_v22  ;;  %v676_v22 = vld [vmem:[%s3279_s5 + $0x58] sm:$0xff]  ;;  %v1713_v24 = vpack.c.bf16 %v671_v19, %v669_v17  ;;  %v689_v17 = vld [vmem:[%s3279_s5 + $0xc0] sm:$0xff]  ;;  %v691_v19 = vld [vmem:[%s3279_s5 + $0xd0] sm:$0xff] }
 0x10b   :  { %v262_v26 = vpop.f32.mrb[22].mxu0  ;;  %v321_v27 = vadd.f32 %v2224_v25, %v2221_v23 }
 0x10c   :  { %v2229_v28 = vadd.f32 %v262_v26, %v2135_v34  ;;  %v264_v29 = vpop.f32.mrb[23].mxu0  ;;  %v1715_v26 = vpack.c.bf16 %v676_v22, %v674_v21  ;;  %v694_v21 = vld [vmem:[%s3279_s5 + $0xe8] sm:$0xff]  ;;  %v696_v22 = vld [vmem:[%s3279_s5 + $0xf8] sm:$0xff] }
 0x10d   :  { %v2232_v30 = vadd.f32 %v264_v29, %v2138_v35  ;;  %322 = vadd.xlane.f32.xlu0 %v321_v27  ;;  %v673_v27 = vld [vmem:[%s3279_s5 + $0x40] sm:$0xff]  ;;  %v675_v29 = vld [vmem:[%s3279_s5 + $0x50] sm:$0xff] }
 0x10f   :  { %v268_v32 = vpop.f32.mrb[24].mxu0  ;;  %v324_v36 = vadd.f32 %v2232_v30, %v2229_v28 }
 0x110   :  { %v2237_v38 = vadd.f32 %v268_v32, %v2135_v34  ;;  %v270_v40 = vpop.f32.mrb[25].mxu0  ;;  %v678_v32 = vld [vmem:[%s3279_s5 + $0x68] sm:$0xff] }
 0x111   :  { %v2240_v41 = vadd.f32 %v270_v40, %v2138_v35  ;;  %325 = vadd.xlane.f32.xlu1 %v324_v36  ;;  %v680_v36 = vld [vmem:[%s3279_s5 + $0x78] sm:$0xff]  ;;  %v1717_v40 = vpack.c.bf16 %v675_v29, %v673_v27  ;;  %v693_v27 = vld [vmem:[%s3279_s5 + $0xe0] sm:$0xff]  ;;  %v695_v29 = vld [vmem:[%s3279_s5 + $0xf0] sm:$0xff] }
 0x113   :  { %v274_v43 = vpop.f32.mrb[26].mxu0  ;;  %v327_v45 = vadd.f32 %v2240_v41, %v2237_v38 }
 0x114   :  { %v2245_v46 = vadd.f32 %v274_v43, %v2135_v34  ;;  %v276_v48 = vpop.f32.mrb[27].mxu0  ;;  %v1719_v43 = vpack.c.bf16 %v680_v36, %v678_v32  ;;  %v698_v32 = vld [vmem:[%s3279_s5 + $0x108] sm:$0xff]  ;;  %v700_v36 = vld [vmem:[%s3279_s5 + $0x118] sm:$0xff] }
 0x115   :  { %v2248_v50 = vadd.f32 %v276_v48, %v2138_v35  ;;  %328 = vadd.xlane.f32.xlu0 %v327_v45  ;;  %v677_v45 = vld [vmem:[%s3279_s5 + $0x60] sm:$0xff]  ;;  %v679_v48 = vld [vmem:[%s3279_s5 + $0x70] sm:$0xff] }
 0x117   :  { %v280_v51 = vpop.f32.mrb[28].mxu0  ;;  %v330_v53 = vadd.f32 %v2248_v50, %v2245_v46 }
 0x118   :  { %v2253_v55 = vadd.f32 %v280_v51, %v2135_v34  ;;  %v282_v56 = vpop.f32.mrb[29].mxu0  ;;  %v682_v51 = vld [vmem:[%s3279_s5 + $0x88] sm:$0xff] }
 0x119   :  { %v2256_v58 = vadd.f32 %v282_v56, %v2138_v35  ;;  %331 = vadd.xlane.f32.xlu1 %v330_v53  ;;  %v684_v53 = vld [vmem:[%s3279_s5 + $0x98] sm:$0xff]  ;;  %v1721_v56 = vpack.c.bf16 %v679_v48, %v677_v45  ;;  %v697_v45 = vld [vmem:[%s3279_s5 + $0x100] sm:$0xff]  ;;  %v699_v48 = vld [vmem:[%s3279_s5 + $0x110] sm:$0xff] }
 0x11b   :  { %v286_v60 = vpop.f32.mrb[30].mxu0  ;;  %v333_v61 = vadd.f32 %v2256_v58, %v2253_v55 }
 0x11c   :  { %v2261_v63 = vadd.f32 %v286_v60, %v2135_v34  ;;  %v288_v1 = vpop.f32.mrb[31].mxu0  ;;  %v665_v34 = vld [vmem:[%s3279_s5] sm:$0xff]  ;;  %v1723_v60 = vpack.c.bf16 %v684_v53, %v682_v51  ;;  %v702_v51 = vld [vmem:[%s3279_s5 + $0x128] sm:$0xff]  ;;  %v704_v53 = vld [vmem:[%s3279_s5 + $0x138] sm:$0xff] }
 0x11d   :  { %v2264_v2 = vadd.f32 %v288_v1, %v2138_v35  ;;  %334 = vadd.xlane.f32.xlu0 %v333_v61  ;;  %v667_v35 = vld [vmem:[%s3279_s5 + $0x10] sm:$0xff]  ;;  %v681_v61 = vld [vmem:[%s3279_s5 + $0x80] sm:$0xff] }
 0x11e   :  { %v1709_v14 = vpack.c.bf16 %v667_v35, %v665_v34  ;;  %v683_v1 = vld [vmem:[%s3279_s5 + $0x90] sm:$0xff] }
 0x11f   :  { %v336_v4 = vadd.f32 %v2264_v2, %v2261_v63  ;;  %v1725_v7 = vpack.c.bf16 %v683_v1, %v681_v61  ;;  %v687_v35 = vld [vmem:[%s3279_s5 + $0xb0] sm:$0xff]  ;;  %v701_v61 = vld [vmem:[%s3279_s5 + $0x120] sm:$0xff] }
 0x120   :  { %1710 = vmatpush1.bf16.msra.mxu1 %v1709_v14  ;;  %v1729_v14 = vpack.c.bf16 %v687_v35, %v685_v9  ;;  %v703_v1 = vld [vmem:[%s3279_s5 + $0x130] sm:$0xff] }
 0x121   :  { %337 = vadd.xlane.f32.xlu1 %v336_v4  ;;  %1712 = vmatprep.subr.bf16.mxu1 %v1711_v16  ;;  %v686_v4 = vld [vmem:[%s3279_s5 + $0xa8] sm:$0xff]  ;;  %v1731_v16 = vpack.c.bf16 %v692_v12, %v690_v11 }
 0x122   :  { %v1727_v34 = vpack.c.bf16 %v688_v6, %v686_v4  ;;  %v1745_v4 = vpack.c.bf16 %v703_v1, %v701_v61 }
 0x124   :  { %1714 = vmatpush1.bf16.msra.mxu1 %v1713_v24  ;;  %v1733_v24 = vpack.c.bf16 %v691_v19, %v689_v17 }
 0x125   :  { %1716 = vmatprep.subr.bf16.mxu1 %v1715_v26  ;;  %v1735_v26 = vpack.c.bf16 %v696_v22, %v694_v21 }
 0x128   :  { %1718 = vmatpush1.bf16.msra.mxu1 %v1717_v40  ;;  %v1737_v40 = vpack.c.bf16 %v695_v29, %v693_v27 }
 0x129   :  { %1720 = vmatprep.subr.bf16.mxu1 %v1719_v43  ;;  %v1739_v43 = vpack.c.bf16 %v700_v36, %v698_v32 }
 0x12c   :  { %1722 = vmatpush1.bf16.msra.mxu1 %v1721_v56  ;;  %v1741_v56 = vpack.c.bf16 %v699_v48, %v697_v45 }
 0x12d   :  { %1724 = vmatprep.subr.bf16.mxu1 %v1723_v60  ;;  %v1743_v60 = vpack.c.bf16 %v704_v53, %v702_v51 }
 0x130   :  { %1726 = vmatpush1.bf16.msra.mxu1 %v1725_v7 }
 0x131   :  { %1728 = vmatprep.subr.bf16.mxu1 %v1727_v34 }
 0x134   :  { %1730 = vmatpush1.bf16.msra.mxu1 %v1729_v14 }
 0x135   :  { %1732 = vmatprep.subr.bf16.mxu1 %v1731_v16 }
 0x138   :  { %1734 = vmatpush1.bf16.msra.mxu1 %v1733_v24 }
 0x139   :  { %1736 = vmatprep.subr.bf16.mxu1 %v1735_v26 }
 0x13c   :  { %1738 = vmatpush1.bf16.msra.mxu1 %v1737_v40 }
 0x13d   :  { %1740 = vmatprep.subr.bf16.mxu1 %v1739_v43 }
 0x140   :  { %1742 = vmatpush1.bf16.msra.mxu1 %v1741_v56 }
 0x141   :  { %1744 = vmatprep.subr.bf16.mxu1 %v1743_v60  ;;  %v708_v60 = vld [vmem:[%s3279_s5 + $0x158] sm:$0xff] }
 0x144   :  { %1746 = vmatpush1.bf16.msra.mxu1 %v1745_v4  ;;  %v705_v4 = vld [vmem:[%s3279_s5 + $0x140] sm:$0xff] }
 0x172   :  { %v293_v6 = vpop.xlane.xlu0 %292 }
 0x173   :  { %v339_v7 = vmul.f32 0.00390625, %v293_v6  ;;  %v707_v6 = vld [vmem:[%s3279_s5 + $0x150] sm:$0xff] }
 0x175   :  { %v2389_v34 = vsub.f32 %v2141_v37, %v339_v7  ;;  %v2392_v9 = vsub.f32 %v2144_v39, %v339_v7  ;;  %v1749_v7 = vpack.c.bf16 %v707_v6, %v705_v4  ;;  %v720_v4 = vld [vmem:[%s3279_s5 + $0x1b8] sm:$0xff] }
 0x176   :  { %v296_v35 = vpop.xlane.xlu0 %295 }
 0x177   :  { %v340_v11 = vmul.f32 0.00390625, %v296_v35  ;;  %v387_v12 = vmul.f32 %v2389_v34, %v2389_v34  ;;  %v388_v14 = vmul.f32 %v2392_v9, %v2392_v9 }
 0x179   :  { %v2399_v16 = vsub.f32 %v2149_v42, %v340_v11  ;;  %v2402_v17 = vsub.f32 %v2152_v44, %v340_v11  ;;  %v419_v19 = vadd.f32 %v388_v14, %v387_v12 }
 0x17a   :  { %v299_v37 = vpop.xlane.xlu1 %298 }
 0x17b   :  { %v341_v21 = vmul.f32 0.00390625, %v299_v37  ;;  %420 = vadd.xlane.f32.xlu0 %v419_v19  ;;  %v389_v39 = vmul.f32 %v2399_v16, %v2399_v16  ;;  %v390_v22 = vmul.f32 %v2402_v17, %v2402_v17  ;;  %v710_v19 = vld [vmem:[%s3279_s5 + $0x168] sm:$0xff]  ;;  %v712_v37 = vld [vmem:[%s3279_s5 + $0x178] sm:$0xff] }
 0x17d   :  { %v2409_v24 = vsub.f32 %v2157_v47, %v341_v21  ;;  %v2412_v26 = vsub.f32 %v2160_v49, %v341_v21  ;;  %v422_v42 = vadd.f32 %v390_v22, %v389_v39  ;;  %v1751_v39 = vpack.c.bf16 %v712_v37, %v710_v19  ;;  %v709_v22 = vld [vmem:[%s3279_s5 + $0x160] sm:$0xff] }
 0x17e   :  { %v302_v27 = vpop.xlane.xlu1 %301 }
 0x17f   :  { %v342_v44 = vmul.f32 0.00390625, %v302_v27  ;;  %423 = vadd.xlane.f32.xlu1 %v422_v42  ;;  %v391_v29 = vmul.f32 %v2409_v24, %v2409_v24  ;;  %v392_v32 = vmul.f32 %v2412_v26, %v2412_v26  ;;  %v711_v42 = vld [vmem:[%s3279_s5 + $0x170] sm:$0xff] }
 0x180   :  { %v1753_v27 = vpack.c.bf16 %v711_v42, %v709_v22  ;;  %v724_v22 = vld [vmem:[%s3279_s5 + $0x1d8] sm:$0xff] }
 0x181   :  { %v2419_v36 = vsub.f32 %v2165_v52, %v342_v44  ;;  %v2422_v40 = vsub.f32 %v2168_v54, %v342_v44  ;;  %v425_v47 = vadd.f32 %v392_v32, %v391_v29  ;;  %v706_v54 = vld [vmem:[%s3279_s5 + $0x148] sm:$0xff] }
 0x182   :  { %v305_v43 = vpop.xlane.xlu0 %304 }
 0x183   :  { %v343_v49 = vmul.f32 0.00390625, %v305_v43  ;;  %426 = vadd.xlane.f32.xlu0 %v425_v47  ;;  %v393_v45 = vmul.f32 %v2419_v36, %v2419_v36  ;;  %v394_v48 = vmul.f32 %v2422_v40, %v2422_v40  ;;  %v714_v43 = vld [vmem:[%s3279_s5 + $0x188] sm:$0xff] }
 0x185   :  { %v2429_v51 = vsub.f32 %v2173_v57, %v343_v49  ;;  %v2432_v53 = vsub.f32 %v2176_v59, %v343_v49  ;;  %v428_v52 = vadd.f32 %v394_v48, %v393_v45  ;;  %v1747_v59 = vpack.c.bf16 %v708_v60, %v706_v54  ;;  %v716_v49 = vld [vmem:[%s3279_s5 + $0x198] sm:$0xff] }
 0x186   :  { %v308_v56 = vpop.xlane.xlu1 %307  ;;  %v1755_v48 = vpack.c.bf16 %v716_v49, %v714_v43 }
 0x187   :  { %v344_v61 = vmul.f32 0.00390625, %v308_v56  ;;  %429 = vadd.xlane.f32.xlu1 %v428_v52  ;;  %v395_v1 = vmul.f32 %v2429_v51, %v2429_v51  ;;  %v396_v57 = vmul.f32 %v2432_v53, %v2432_v53  ;;  %1748 = vmatprep.subr.bf16.mxu1 %v1747_v59  ;;  %v713_v52 = vld [vmem:[%s3279_s5 + $0x180] sm:$0xff]  ;;  %v715_v56 = vld [vmem:[%s3279_s5 + $0x190] sm:$0xff]  ;;  %v718_v59 = vld [vmem:[%s3279_s5 + $0x1a8] sm:$0xff] }
 0x188   :  { %1750 = vmatpush1.bf16.msra.mxu1 %v1749_v7  ;;  %v1757_v54 = vpack.c.bf16 %v715_v56, %v713_v52  ;;  %v1759_v7 = vpack.c.bf16 %v720_v4, %v718_v59  ;;  %v728_v52 = vld [vmem:[%s3279_s5 + $0x1f8] sm:$0xff] }
 0x189   :  { %v2451_v35 = vsub.f32 %v2181_v62, %v344_v61  ;;  %v2454_v11 = vsub.f32 %v2184_v0, %v344_v61  ;;  %v431_v12 = vadd.f32 %v396_v57, %v395_v1  ;;  %1752 = vmatprep.subr.bf16.mxu1 %v1751_v39  ;;  %v722_v39 = vld [vmem:[%s3279_s5 + $0x1c8] sm:$0xff] }
 0x18a   :  { %v311_v14 = vpop.xlane.xlu0 %310 }
 0x18b   :  { %v345_v21 = vmul.f32 0.00390625, %v311_v14  ;;  %432 = vadd.xlane.f32.xlu0 %v431_v12  ;;  %v397_v62 = vmul.f32 %v2451_v35, %v2451_v35  ;;  %v398_v0 = vmul.f32 %v2454_v11, %v2454_v11  ;;  %v717_v12 = vld [vmem:[%s3279_s5 + $0x1a0] sm:$0xff]  ;;  %v719_v14 = vld [vmem:[%s3279_s5 + $0x1b0] sm:$0xff] }
 0x18c   :  { %1754 = vmatpush1.bf16.msra.mxu1 %v1753_v27  ;;  %v1761_v19 = vpack.c.bf16 %v719_v14, %v717_v12  ;;  %v1763_v27 = vpack.c.bf16 %v724_v22, %v722_v39 }
 0x18d   :  { %v2473_v44 = vsub.f32 %v2189_v3, %v345_v21  ;;  %v2476_v29 = vsub.f32 %v2192_v5, %v345_v21  ;;  %v434_v32 = vadd.f32 %v398_v0, %v397_v62  ;;  %1756 = vmatprep.subr.bf16.mxu1 %v1755_v48  ;;  %v726_v48 = vld [vmem:[%s3279_s5 + $0x1e8] sm:$0xff] }
 0x18e   :  { %v314_v47 = vpop.xlane.xlu1 %313 }
 0x18f   :  { %v346_v45 = vmul.f32 0.00390625, %v314_v47  ;;  %435 = vadd.xlane.f32.xlu1 %v434_v32  ;;  %v399_v3 = vmul.f32 %v2473_v44, %v2473_v44  ;;  %v400_v5 = vmul.f32 %v2476_v29, %v2476_v29  ;;  %v721_v32 = vld [vmem:[%s3279_s5 + $0x1c0] sm:$0xff]  ;;  %v723_v47 = vld [vmem:[%s3279_s5 + $0x1d0] sm:$0xff] }
 0x190   :  { %1758 = vmatpush1.bf16.msra.mxu1 %v1757_v54  ;;  %v1765_v43 = vpack.c.bf16 %v723_v47, %v721_v32  ;;  %v1767_v54 = vpack.c.bf16 %v728_v52, %v726_v48 }
 0x191   :  { %v2495_v60 = vsub.f32 %v2197_v8, %v346_v45  ;;  %v2498_v61 = vsub.f32 %v2200_v10, %v346_v45  ;;  %v437_v1 = vadd.f32 %v400_v5, %v399_v3  ;;  %1760 = vmatprep.subr.bf16.mxu1 %v1759_v7 }
 0x192   :  { %v317_v57 = vpop.xlane.xlu0 %316 }
 0x193   :  { %v347_v6 = vmul.f32 0.00390625, %v317_v57  ;;  %438 = vadd.xlane.f32.xlu0 %v437_v1  ;;  %v401_v8 = vmul.f32 %v2495_v60, %v2495_v60  ;;  %v402_v10 = vmul.f32 %v2498_v61, %v2498_v61  ;;  %v725_v1 = vld [vmem:[%s3279_s5 + $0x1e0] sm:$0xff]  ;;  %v727_v57 = vld [vmem:[%s3279_s5 + $0x1f0] sm:$0xff] }
 0x194   :  { %1762 = vmatpush1.bf16.msra.mxu1 %v1761_v19  ;;  %v1769_v59 = vpack.c.bf16 %v727_v57, %v725_v1 }
 0x195   :  { %v2517_v37 = vsub.f32 %v2205_v13, %v347_v6  ;;  %v2520_v21 = vsub.f32 %v2208_v15, %v347_v6  ;;  %v440_v62 = vadd.f32 %v402_v10, %v401_v8  ;;  %1764 = vmatprep.subr.bf16.mxu1 %v1763_v27 }
 0x196   :  { %v320_v0 = vpop.xlane.xlu1 %319 }
 0x197   :  { %v348_v42 = vmul.f32 0.00390625, %v320_v0  ;;  %441 = vadd.xlane.f32.xlu1 %v440_v62  ;;  %v403_v13 = vmul.f32 %v2517_v37, %v2517_v37  ;;  %v404_v15 = vmul.f32 %v2520_v21, %v2520_v21 }
 0x198   :  { %1766 = vmatpush1.bf16.msra.mxu1 %v1765_v43 }
 0x199   :  { %v2539_v49 = vsub.f32 %v2213_v18, %v348_v42  ;;  %v2542_v45 = vsub.f32 %v2216_v20, %v348_v42  ;;  %v443_v3 = vadd.f32 %v404_v15, %v403_v13  ;;  %1768 = vmatprep.subr.bf16.mxu1 %v1767_v54 }
 0x19a   :  { %v323_v5 = vpop.xlane.xlu0 %322 }
 0x19b   :  { %v349_v56 = vmul.f32 0.00390625, %v323_v5  ;;  %444 = vadd.xlane.f32.xlu0 %v443_v3  ;;  %v405_v18 = vmul.f32 %v2539_v49, %v2539_v49  ;;  %v406_v20 = vmul.f32 %v2542_v45, %v2542_v45 }
 0x19c   :  { %1770 = vmatpush1.bf16.msra.mxu1 %v1769_v59 }
 0x19d   :  { %v2561_v4 = vsub.f32 %v2221_v23, %v349_v56  ;;  %v2564_v6 = vsub.f32 %v2224_v25, %v349_v56  ;;  %v446_v8 = vadd.f32 %v406_v20, %v405_v18 }
 0x19e   :  { %v326_v10 = vpop.xlane.xlu1 %325 }
 0x19f   :  { %v350_v7 = vmul.f32 0.00390625, %v326_v10  ;;  %447 = vadd.xlane.f32.xlu1 %v446_v8  ;;  %v407_v12 = vmul.f32 %v2561_v4, %v2561_v4  ;;  %v408_v14 = vmul.f32 %v2564_v6, %v2564_v6 }
 0x1a1   :  { %v2571_v19 = vsub.f32 %v2229_v28, %v350_v7  ;;  %v2574_v23 = vsub.f32 %v2232_v30, %v350_v7  ;;  %v449_v25 = vadd.f32 %v408_v14, %v407_v12 }
 0x1a2   :  { %v329_v62 = vpop.xlane.xlu0 %328 }
 0x1a3   :  { %v351_v0 = vmul.f32 0.00390625, %v329_v62  ;;  %450 = vadd.xlane.f32.xlu0 %v449_v25  ;;  %v409_v39 = vmul.f32 %v2571_v19, %v2571_v19  ;;  %v410_v22 = vmul.f32 %v2574_v23, %v2574_v23 }
 0x1a5   :  { %v2581_v42 = vsub.f32 %v2237_v38, %v351_v0  ;;  %v2584_v13 = vsub.f32 %v2240_v41, %v351_v0  ;;  %v452_v28 = vadd.f32 %v410_v22, %v409_v39  ;;  %v40_v39 = vld [vmem:[%s3277_s3] sm:$0x3] }
 0x1a6   :  { %v332_v15 = vpop.xlane.xlu1 %331 }
 0x1a7   :  { %v352_v30 = vmul.f32 0.00390625, %v332_v15  ;;  %453 = vadd.xlane.f32.xlu1 %v452_v28  ;;  %v411_v27 = vmul.f32 %v2581_v42, %v2581_v42  ;;  %v412_v32 = vmul.f32 %v2584_v13, %v2584_v13  ;;  %v41_v15 = vld [vmem:[%s3278_s4] sm:$0x3] }
 0x1a9   :  { %v2591_v47 = vsub.f32 %v2245_v46, %v352_v30  ;;  %v2594_v43 = vsub.f32 %v2248_v50, %v352_v30  ;;  %v455_v38 = vadd.f32 %v412_v32, %v411_v27  ;;  %v2627_v30 = vrot.slane %v40_v39, %v2127_v31 }
 0x1aa   :  { %v335_v3 = vpop.xlane.xlu0 %334  ;;  %v2630_v27 = vrot.slane %v40_v39, %v2132_v33 }
 0x1ab   :  { %v353_v41 = vmul.f32 0.00390625, %v335_v3  ;;  %456 = vadd.xlane.f32.xlu0 %v455_v38  ;;  %v413_v5 = vmul.f32 %v2591_v47, %v2591_v47  ;;  %v414_v48 = vmul.f32 %v2594_v43, %v2594_v43 }
 0x1ad   :  { %v2601_v52 = vsub.f32 %v2253_v55, %v353_v41  ;;  %v2604_v56 = vsub.f32 %v2256_v58, %v353_v41  ;;  %v458_v46 = vadd.f32 %v414_v48, %v413_v5  ;;  %v2634_v5 = vrot.slane %v41_v15, %v2127_v31 }
 0x1ae   :  { %v338_v18 = vpop.xlane.xlu1 %337  ;;  %v2637_v48 = vrot.slane %v41_v15, %v2132_v33 }
 0x1af   :  { %v354_v50 = vmul.f32 0.00390625, %v338_v18  ;;  %459 = vadd.xlane.f32.xlu1 %v458_v46  ;;  %v415_v20 = vmul.f32 %v2601_v52, %v2601_v52  ;;  %v416_v54 = vmul.f32 %v2604_v56, %v2604_v56 }
 0x1b1   :  { %v2611_v1 = vsub.f32 %v2261_v63, %v354_v50  ;;  %v2614_v57 = vsub.f32 %v2264_v2, %v354_v50  ;;  %v461_v55 = vadd.f32 %v416_v54, %v415_v20 }
 0x1b3   :  { %462 = vadd.xlane.f32.xlu0 %v461_v55  ;;  %v417_v58 = vmul.f32 %v2611_v1, %v2611_v1  ;;  %v418_v59 = vmul.f32 %v2614_v57, %v2614_v57 }
 0x1b5   :  { %v464_v8 = vadd.f32 %v418_v59, %v417_v58 }
 0x1b7   :  { %465 = vadd.xlane.f32.xlu1 %v464_v8 }
 0x208   :  { %v421_v10 = vpop.xlane.xlu0 %420 }
 0x209   :  { %v467_v7 = vmul.f32 0.00390625, %v421_v10 }
 0x20b   :  { %v483_v12 = vadd.f32 1e-05, %v467_v7 }
 0x20c   :  { %v424_v14 = vpop.xlane.xlu1 %423 }
 0x20d   :  { %1823 = vrsqrt.f32 %v483_v12  ;;  %v468_v63 = vmul.f32 0.00390625, %v424_v14 }
 0x20f   :  { %v484_v25 = vadd.f32 1e-05, %v468_v63 }
 0x210   :  { %v427_v62 = vpop.xlane.xlu0 %426 }
 0x211   :  { %1825 = vrsqrt.f32 %v484_v25  ;;  %v469_v2 = vmul.f32 0.00390625, %v427_v62 }
 0x213   :  { %v485_v0 = vadd.f32 1e-05, %v469_v2 }
 0x214   :  { %v430_v22 = vpop.xlane.xlu1 %429 }
 0x215   :  { %1827 = vrsqrt.f32 %v485_v0  ;;  %v470_v28 = vmul.f32 0.00390625, %v430_v22 }
 0x217   :  { %v1824_v32 = vpop.eup %1823  ;;  %v486_v38 = vadd.f32 1e-05, %v470_v28 }
 0x218   :  { %v433_v3 = vpop.xlane.xlu0 %432  ;;  %v516_v41 = vmul.f32 %v1824_v32, %v2392_v9  ;;  %v515_v46 = vmul.f32 %v1824_v32, %v2389_v34 }
 0x219   :  { %1829 = vrsqrt.f32 %v486_v38  ;;  %v471_v18 = vmul.f32 0.00390625, %v433_v3 }
 0x21a   :  { %v559_v50 = vmul.f32 %v2630_v27, %v516_v41  ;;  %v558_v20 = vmul.f32 %v2627_v30, %v515_v46 }
 0x21b   :  { %v1826_v54 = vpop.eup %1825  ;;  %v487_v55 = vadd.f32 1e-05, %v471_v18 }
 0x21c   :  { %v436_v58 = vpop.xlane.xlu1 %435  ;;  %v602_v59 = vadd.f32 %v2637_v48, %v559_v50  ;;  %v601_v9 = vadd.f32 %v2634_v5, %v558_v20  ;;  %v518_v8 = vmul.f32 %v1826_v54, %v2402_v17  ;;  %v517_v10 = vmul.f32 %v1826_v54, %v2399_v16 }
 0x21d   :  { %1831 = vrsqrt.f32 %v487_v55  ;;  %v472_v7 = vmul.f32 0.00390625, %v436_v58 }
 0x21e   :  { %v634_v34 = vmax.f32 %v602_v59, 0.0  ;;  %v633_v12 = vmax.f32 %v601_v9, 0.0  ;;  %v561_v14 = vmul.f32 %v2630_v27, %v518_v8  ;;  %v560_v63 = vmul.f32 %v2627_v30, %v517_v10 }
 0x21f   :  { %v1828_v25 = vpop.eup %1827  ;;  %v488_v62 = vadd.f32 1e-05, %v472_v7 }
 0x220   :  { %804 = vmatprep.mubr.f32.mxu1 %v634_v34  ;;  %v439_v2 = vpop.xlane.xlu0 %438  ;;  %v604_v0 = vadd.f32 %v2637_v48, %v561_v14  ;;  %v603_v39 = vadd.f32 %v2634_v5, %v560_v63  ;;  %v520_v17 = vmul.f32 %v1828_v25, %v2412_v26  ;;  %v519_v16 = vmul.f32 %v1828_v25, %v2409_v24 }
 0x221   :  { %1833 = vrsqrt.f32 %v488_v62  ;;  %v473_v22 = vmul.f32 0.00390625, %v439_v2  ;;  %805 = vmatmul.mubr.f32.vlgmr.msra.gmra.mrb[0].mxu1 %v633_v12 }
 0x222   :  { %v636_v28 = vmax.f32 %v604_v0, 0.0  ;;  %v635_v15 = vmax.f32 %v603_v39, 0.0  ;;  %v563_v32 = vmul.f32 %v2630_v27, %v520_v17  ;;  %v562_v38 = vmul.f32 %v2627_v30, %v519_v16 }
 0x223   :  { %v1830_v3 = vpop.eup %1829  ;;  %v489_v41 = vadd.f32 1e-05, %v473_v22 }
 0x224   :  { %v442_v46 = vpop.xlane.xlu1 %441  ;;  %810 = vmatprep.mubr.f32.mxu1 %v636_v28  ;;  %v606_v18 = vadd.f32 %v2637_v48, %v563_v32  ;;  %v605_v50 = vadd.f32 %v2634_v5, %v562_v38  ;;  %v522_v26 = vmul.f32 %v1830_v3, %v2422_v40  ;;  %v521_v24 = vmul.f32 %v1830_v3, %v2419_v36 }
 0x225   :  { %1835 = vrsqrt.f32 %v489_v41  ;;  %v474_v20 = vmul.f32 0.00390625, %v442_v46  ;;  %811 = vmatmul.mubr.f32.gmra.mrb[2].mxu1 %v635_v15 }
 0x226   :  { %v638_v54 = vmax.f32 %v606_v18, 0.0  ;;  %v637_v55 = vmax.f32 %v605_v50, 0.0  ;;  %v565_v58 = vmul.f32 %v2630_v27, %v522_v26  ;;  %v564_v59 = vmul.f32 %v2627_v30, %v521_v24 }
 0x227   :  { %v1832_v9 = vpop.eup %1831  ;;  %v490_v8 = vadd.f32 1e-05, %v474_v20 }
 0x228   :  { %816 = vmatprep.mubr.f32.mxu1 %v638_v54  ;;  %v445_v10 = vpop.xlane.xlu0 %444  ;;  %v608_v7 = vadd.f32 %v2637_v48, %v565_v58  ;;  %v607_v34 = vadd.f32 %v2634_v5, %v564_v59  ;;  %v524_v40 = vmul.f32 %v1832_v9, %v2432_v53  ;;  %v523_v36 = vmul.f32 %v1832_v9, %v2429_v51 }
 0x229   :  { %1837 = vrsqrt.f32 %v490_v8  ;;  %v475_v12 = vmul.f32 0.00390625, %v445_v10  ;;  %817 = vmatmul.mubr.f32.gmra.mrb[4].mxu1 %v637_v55 }
 0x22a   :  { %v640_v14 = vmax.f32 %v608_v7, 0.0  ;;  %v639_v63 = vmax.f32 %v607_v34, 0.0  ;;  %v567_v25 = vmul.f32 %v2630_v27, %v524_v40  ;;  %v566_v62 = vmul.f32 %v2627_v30, %v523_v36 }
 0x22b   :  { %v1834_v2 = vpop.eup %1833  ;;  %v491_v0 = vadd.f32 1e-05, %v475_v12 }
 0x22c   :  { %v448_v39 = vpop.xlane.xlu1 %447  ;;  %822 = vmatprep.mubr.f32.mxu1 %v640_v14  ;;  %v610_v17 = vadd.f32 %v2637_v48, %v567_v25  ;;  %v609_v16 = vadd.f32 %v2634_v5, %v566_v62  ;;  %v526_v53 = vmul.f32 %v1834_v2, %v2454_v11  ;;  %v525_v51 = vmul.f32 %v1834_v2, %v2451_v35 }
 0x22d   :  { %1839 = vrsqrt.f32 %v491_v0  ;;  %v476_v22 = vmul.f32 0.00390625, %v448_v39  ;;  %823 = vmatmul.mubr.f32.gmra.mrb[6].mxu1 %v639_v63 }
 0x22e   :  { %v642_v28 = vmax.f32 %v610_v17, 0.0  ;;  %v641_v15 = vmax.f32 %v609_v16, 0.0  ;;  %v569_v32 = vmul.f32 %v2630_v27, %v526_v53  ;;  %v568_v38 = vmul.f32 %v2627_v30, %v525_v51 }
 0x22f   :  { %v1836_v3 = vpop.eup %1835  ;;  %v492_v41 = vadd.f32 1e-05, %v476_v22 }
 0x230   :  { %828 = vmatprep.mubr.f32.mxu1 %v642_v28  ;;  %v451_v46 = vpop.xlane.xlu0 %450  ;;  %v612_v18 = vadd.f32 %v2637_v48, %v569_v32  ;;  %v611_v50 = vadd.f32 %v2634_v5, %v568_v38  ;;  %v528_v11 = vmul.f32 %v1836_v3, %v2476_v29  ;;  %v527_v35 = vmul.f32 %v1836_v3, %v2473_v44 }
 0x231   :  { %1841 = vrsqrt.f32 %v492_v41  ;;  %v477_v26 = vmul.f32 0.00390625, %v451_v46  ;;  %829 = vmatmul.mubr.f32.gmra.mrb[8].mxu1 %v641_v15 }
 0x232   :  { %v644_v24 = vmax.f32 %v612_v18, 0.0  ;;  %v643_v20 = vmax.f32 %v611_v50, 0.0  ;;  %v571_v54 = vmul.f32 %v2630_v27, %v528_v11  ;;  %v570_v55 = vmul.f32 %v2627_v30, %v527_v35 }
 0x233   :  { %v1838_v58 = vpop.eup %1837  ;;  %v493_v59 = vadd.f32 1e-05, %v477_v26 }
 0x234   :  { %v454_v9 = vpop.xlane.xlu1 %453  ;;  %834 = vmatprep.mubr.f32.mxu1 %v644_v24  ;;  %v614_v8 = vadd.f32 %v2637_v48, %v571_v54  ;;  %v613_v10 = vadd.f32 %v2634_v5, %v570_v55  ;;  %v530_v29 = vmul.f32 %v1838_v58, %v2498_v61  ;;  %v529_v44 = vmul.f32 %v1838_v58, %v2495_v60 }
 0x235   :  { %1843 = vrsqrt.f32 %v493_v59  ;;  %v478_v7 = vmul.f32 0.00390625, %v454_v9  ;;  %835 = vmatmul.mubr.f32.gmra.mrb[10].mxu1 %v643_v20 }
 0x236   :  { %v646_v34 = vmax.f32 %v614_v8, 0.0  ;;  %v645_v40 = vmax.f32 %v613_v10, 0.0  ;;  %v573_v36 = vmul.f32 %v2630_v27, %v530_v29  ;;  %v572_v12 = vmul.f32 %v2627_v30, %v529_v44 }
 0x237   :  { %v1840_v14 = vpop.eup %1839  ;;  %v494_v63 = vadd.f32 1e-05, %v478_v7 }
 0x238   :  { %840 = vmatprep.mubr.f32.mxu1 %v646_v34  ;;  %v457_v25 = vpop.xlane.xlu0 %456  ;;  %v616_v62 = vadd.f32 %v2637_v48, %v573_v36  ;;  %v615_v2 = vadd.f32 %v2634_v5, %v572_v12  ;;  %v532_v61 = vmul.f32 %v1840_v14, %v2520_v21  ;;  %v531_v60 = vmul.f32 %v1840_v14, %v2517_v37 }
 0x239   :  { %1845 = vrsqrt.f32 %v494_v63  ;;  %v479_v0 = vmul.f32 0.00390625, %v457_v25  ;;  %841 = vmatmul.mubr.f32.gmra.mrb[12].mxu1 %v645_v40 }
 0x23a   :  { %v648_v39 = vmax.f32 %v616_v62, 0.0  ;;  %v647_v17 = vmax.f32 %v615_v2, 0.0  ;;  %v575_v16 = vmul.f32 %v2630_v27, %v532_v61  ;;  %v574_v53 = vmul.f32 %v2627_v30, %v531_v60 }
 0x23b   :  { %v1842_v51 = vpop.eup %1841  ;;  %v495_v22 = vadd.f32 1e-05, %v479_v0 }
 0x23c   :  { %v460_v28 = vpop.xlane.xlu1 %459  ;;  %846 = vmatprep.mubr.f32.mxu1 %v648_v39  ;;  %v618_v15 = vadd.f32 %v2637_v48, %v575_v16  ;;  %v617_v32 = vadd.f32 %v2634_v5, %v574_v53  ;;  %v534_v21 = vmul.f32 %v1842_v51, %v2542_v45  ;;  %v533_v37 = vmul.f32 %v1842_v51, %v2539_v49 }
 0x23d   :  { %1847 = vrsqrt.f32 %v495_v22  ;;  %v480_v38 = vmul.f32 0.00390625, %v460_v28  ;;  %847 = vmatmul.mubr.f32.gmra.mrb[14].mxu1 %v647_v17 }
 0x23e   :  { %v650_v3 = vmax.f32 %v618_v15, 0.0  ;;  %v649_v41 = vmax.f32 %v617_v32, 0.0  ;;  %v577_v46 = vmul.f32 %v2630_v27, %v534_v21  ;;  %v576_v18 = vmul.f32 %v2627_v30, %v533_v37 }
 0x23f   :  { %v1844_v50 = vpop.eup %1843  ;;  %v496_v11 = vadd.f32 1e-05, %v480_v38 }
 0x240   :  { %852 = vmatprep.mubr.f32.mxu1 %v650_v3  ;;  %v463_v35 = vpop.xlane.xlu0 %462  ;;  %v620_v26 = vadd.f32 %v2637_v48, %v577_v46  ;;  %v619_v24 = vadd.f32 %v2634_v5, %v576_v18  ;;  %v536_v45 = vmul.f32 %v1844_v50, %v2564_v6  ;;  %v535_v49 = vmul.f32 %v1844_v50, %v2561_v4 }
 0x241   :  { %1849 = vrsqrt.f32 %v496_v11  ;;  %v481_v20 = vmul.f32 0.00390625, %v463_v35  ;;  %853 = vmatmul.mubr.f32.gmra.mrb[16].mxu1 %v649_v41 }
 0x242   :  { %v652_v54 = vmax.f32 %v620_v26, 0.0  ;;  %v651_v55 = vmax.f32 %v619_v24, 0.0  ;;  %v579_v58 = vmul.f32 %v2630_v27, %v536_v45  ;;  %v578_v59 = vmul.f32 %v2627_v30, %v535_v49 }
 0x243   :  { %v1846_v9 = vpop.eup %1845  ;;  %v497_v8 = vadd.f32 1e-05, %v481_v20 }
 0x244   :  { %v466_v10 = vpop.xlane.xlu1 %465  ;;  %858 = vmatprep.mubr.f32.mxu1 %v652_v54  ;;  %v622_v29 = vadd.f32 %v2637_v48, %v579_v58  ;;  %v621_v44 = vadd.f32 %v2634_v5, %v578_v59  ;;  %v538_v6 = vmul.f32 %v1846_v9, %v2574_v23  ;;  %v537_v4 = vmul.f32 %v1846_v9, %v2571_v19 }
 0x245   :  { %1851 = vrsqrt.f32 %v497_v8  ;;  %v482_v7 = vmul.f32 0.00390625, %v466_v10  ;;  %859 = vmatmul.mubr.f32.gmra.mrb[18].mxu1 %v651_v55 }
 0x246   :  { %v654_v34 = vmax.f32 %v622_v29, 0.0  ;;  %v653_v40 = vmax.f32 %v621_v44, 0.0  ;;  %v581_v36 = vmul.f32 %v2630_v27, %v538_v6  ;;  %v580_v12 = vmul.f32 %v2627_v30, %v537_v4 }
 0x247   :  { %v1848_v14 = vpop.eup %1847  ;;  %v498_v63 = vadd.f32 1e-05, %v482_v7 }
 0x248   :  { %864 = vmatprep.mubr.f32.mxu1 %v654_v34  ;;  %v624_v25 = vadd.f32 %v2637_v48, %v581_v36  ;;  %v623_v62 = vadd.f32 %v2634_v5, %v580_v12  ;;  %v540_v23 = vmul.f32 %v1848_v14, %v2584_v13  ;;  %v539_v19 = vmul.f32 %v1848_v14, %v2581_v42 }
 0x249   :  { %1853 = vrsqrt.f32 %v498_v63  ;;  %865 = vmatmul.mubr.f32.gmra.mrb[20].mxu1 %v653_v40 }
 0x24a   :  { %v656_v2 = vmax.f32 %v624_v25, 0.0  ;;  %v655_v61 = vmax.f32 %v623_v62, 0.0  ;;  %v583_v60 = vmul.f32 %v2630_v27, %v540_v23  ;;  %v582_v0 = vmul.f32 %v2627_v30, %v539_v19 }
 0x24b   :  { %v1850_v39 = vpop.eup %1849 }
 0x24c   :  { %870 = vmatprep.mubr.f32.mxu1 %v656_v2  ;;  %v626_v17 = vadd.f32 %v2637_v48, %v583_v60  ;;  %v625_v16 = vadd.f32 %v2634_v5, %v582_v0  ;;  %v542_v53 = vmul.f32 %v1850_v39, %v2594_v43  ;;  %v541_v13 = vmul.f32 %v1850_v39, %v2591_v47 }
 0x24d   :  { %871 = vmatmul.mubr.f32.gmra.mrb[22].mxu1 %v655_v61 }
 0x24e   :  { %v658_v42 = vmax.f32 %v626_v17, 0.0  ;;  %v657_v51 = vmax.f32 %v625_v16, 0.0  ;;  %v585_v22 = vmul.f32 %v2630_v27, %v542_v53  ;;  %v584_v28 = vmul.f32 %v2627_v30, %v541_v13 }
 0x24f   :  { %v1852_v15 = vpop.eup %1851 }
 0x250   :  { %876 = vmatprep.mubr.f32.mxu1 %v658_v42  ;;  %v628_v32 = vadd.f32 %v2637_v48, %v585_v22  ;;  %v627_v21 = vadd.f32 %v2634_v5, %v584_v28  ;;  %v544_v37 = vmul.f32 %v1852_v15, %v2604_v56  ;;  %v543_v38 = vmul.f32 %v1852_v15, %v2601_v52 }
 0x251   :  { %877 = vmatmul.mubr.f32.gmra.mrb[24].mxu1 %v657_v51 }
 0x252   :  { %v660_v43 = vmax.f32 %v628_v32, 0.0  ;;  %v659_v47 = vmax.f32 %v627_v21, 0.0  ;;  %v587_v3 = vmul.f32 %v2630_v27, %v544_v37  ;;  %v586_v41 = vmul.f32 %v2627_v30, %v543_v38 }
 0x253   :  { %v1854_v46 = vpop.eup %1853 }
 0x254   :  { %882 = vmatprep.mubr.f32.mxu1 %v660_v43  ;;  %v630_v18 = vadd.f32 %v2637_v48, %v587_v3  ;;  %v629_v50 = vadd.f32 %v2634_v5, %v586_v41  ;;  %v546_v11 = vmul.f32 %v1854_v46, %v2614_v57  ;;  %v545_v35 = vmul.f32 %v1854_v46, %v2611_v1  ;;  %v42_v1 = vld [vmem:[%s3280_s6] sm:$0x3] }
 0x255   :  { %883 = vmatmul.mubr.f32.gmra.mrb[26].mxu1 %v659_v47  ;;  %v2738_v57 = vrot.slane %v42_v1, %v2127_v31 }
 0x256   :  { %v662_v56 = vmax.f32 %v630_v18, 0.0  ;;  %v661_v52 = vmax.f32 %v629_v50, 0.0  ;;  %v589_v26 = vmul.f32 %v2630_v27, %v546_v11  ;;  %v588_v24 = vmul.f32 %v2627_v30, %v545_v35 }
 0x257   :  { %v2741_v27 = vrot.slane %v42_v1, %v2132_v33 }
 0x258   :  { %888 = vmatprep.mubr.f32.mxu1 %v662_v56  ;;  %v632_v45 = vadd.f32 %v2637_v48, %v589_v26  ;;  %v631_v49 = vadd.f32 %v2634_v5, %v588_v24 }
 0x259   :  { %889 = vmatmul.mubr.f32.gmra.mrb[28].mxu1 %v661_v52 }
 0x25a   :  { %v664_v20 = vmax.f32 %v632_v45, 0.0  ;;  %v663_v54 = vmax.f32 %v631_v49, 0.0 }
 0x25c   :  { %894 = vmatprep.mubr.f32.mxu1 %v664_v20 }
 0x25d   :  { %895 = vmatmul.mubr.f32.gmra.mrb[30].mxu1 %v663_v54 }
 0x2f4   :  { %v806_v30 = vpop.f32.mrb[0].mxu1 }
 0x2f5   :  { %v2744_v48 = vadd.f32 %v806_v30, %v2738_v57  ;;  %v808_v5 = vpop.f32.mrb[1].mxu1 }
 0x2f6   :  { %v2747_v55 = vadd.f32 %v808_v5, %v2741_v27 }
 0x2f8   :  { %v812_v58 = vpop.f32.mrb[2].mxu1  ;;  %v901_v59 = vadd.f32 %v2747_v55, %v2744_v48 }
 0x2f9   :  { %v2752_v9 = vadd.f32 %v812_v58, %v2738_v57  ;;  %v814_v8 = vpop.f32.mrb[3].mxu1 }
 0x2fa   :  { %v2755_v10 = vadd.f32 %v814_v8, %v2741_v27  ;;  %902 = vadd.xlane.f32.xlu0 %v901_v59 }
 0x2fc   :  { %v818_v29 = vpop.f32.mrb[4].mxu1  ;;  %v904_v44 = vadd.f32 %v2755_v10, %v2752_v9 }
 0x2fd   :  { %v2760_v6 = vadd.f32 %v818_v29, %v2738_v57  ;;  %v820_v4 = vpop.f32.mrb[5].mxu1 }
 0x2fe   :  { %v2763_v7 = vadd.f32 %v820_v4, %v2741_v27  ;;  %905 = vadd.xlane.f32.xlu1 %v904_v44 }
 0x300   :  { %v824_v34 = vpop.f32.mrb[6].mxu1  ;;  %v907_v40 = vadd.f32 %v2763_v7, %v2760_v6 }
 0x301   :  { %v2768_v36 = vadd.f32 %v824_v34, %v2738_v57  ;;  %v826_v12 = vpop.f32.mrb[7].mxu1 }
 0x302   :  { %v2771_v14 = vadd.f32 %v826_v12, %v2741_v27  ;;  %908 = vadd.xlane.f32.xlu0 %v907_v40 }
 0x304   :  { %v830_v63 = vpop.f32.mrb[8].mxu1  ;;  %v910_v25 = vadd.f32 %v2771_v14, %v2768_v36 }
 0x305   :  { %v2776_v62 = vadd.f32 %v830_v63, %v2738_v57  ;;  %v832_v23 = vpop.f32.mrb[9].mxu1 }
 0x306   :  { %v2779_v19 = vadd.f32 %v832_v23, %v2741_v27  ;;  %911 = vadd.xlane.f32.xlu1 %v910_v25 }
 0x308   :  { %v836_v2 = vpop.f32.mrb[10].mxu1  ;;  %v913_v61 = vadd.f32 %v2779_v19, %v2776_v62 }
 0x309   :  { %v2784_v60 = vadd.f32 %v836_v2, %v2738_v57  ;;  %v838_v0 = vpop.f32.mrb[11].mxu1 }
 0x30a   :  { %v2787_v39 = vadd.f32 %v838_v0, %v2741_v27  ;;  %914 = vadd.xlane.f32.xlu0 %v913_v61 }
 0x30c   :  { %v842_v17 = vpop.f32.mrb[12].mxu1  ;;  %v916_v16 = vadd.f32 %v2787_v39, %v2784_v60 }
 0x30d   :  { %v2792_v53 = vadd.f32 %v842_v17, %v2738_v57  ;;  %v844_v13 = vpop.f32.mrb[13].mxu1 }
 0x30e   :  { %v2795_v42 = vadd.f32 %v844_v13, %v2741_v27  ;;  %917 = vadd.xlane.f32.xlu1 %v916_v16 }
 0x310   :  { %v848_v51 = vpop.f32.mrb[14].mxu1  ;;  %v919_v22 = vadd.f32 %v2795_v42, %v2792_v53 }
 0x311   :  { %v2800_v28 = vadd.f32 %v848_v51, %v2738_v57  ;;  %v850_v15 = vpop.f32.mrb[15].mxu1  ;;  %v1291_v51 = vld [vmem:[%s3283_s9 + $0x80] sm:$0xff] }
 0x312   :  { %v2803_v32 = vadd.f32 %v850_v15, %v2741_v27  ;;  %920 = vadd.xlane.f32.xlu0 %v919_v22  ;;  %v1292_v22 = vld [vmem:[%s3283_s9 + $0x88] sm:$0xff] }
 0x313   :  { %v1771_v15 = vpack.c.bf16 %v1292_v22, %v1291_v51 }
 0x314   :  { %v854_v21 = vpop.f32.mrb[16].mxu1  ;;  %v922_v37 = vadd.f32 %v2803_v32, %v2800_v28 }
 0x315   :  { %v2808_v38 = vadd.f32 %v854_v21, %v2738_v57  ;;  %v856_v43 = vpop.f32.mrb[17].mxu1  ;;  %v1293_v21 = vld [vmem:[%s3283_s9 + $0x90] sm:$0xff]  ;;  %1772 = vmatprep.subr.bf16.mxu0 %v1771_v15  ;;  %1803 = vmatprep.subr.bf16.mxu1 %v1771_v15 }
 0x316   :  { %v2811_v47 = vadd.f32 %v856_v43, %v2741_v27  ;;  %923 = vadd.xlane.f32.xlu1 %v922_v37  ;;  %v1294_v37 = vld [vmem:[%s3283_s9 + $0x98] sm:$0xff] }
 0x318   :  { %v860_v3 = vpop.f32.mrb[18].mxu1  ;;  %v925_v41 = vadd.f32 %v2811_v47, %v2808_v38 }
 0x319   :  { %v2816_v46 = vadd.f32 %v860_v3, %v2738_v57  ;;  %v862_v18 = vpop.f32.mrb[19].mxu1  ;;  %v1775_v3 = vpack.c.bf16 %v1294_v37, %v1293_v21 }
 0x31a   :  { %v2819_v50 = vadd.f32 %v862_v18, %v2741_v27  ;;  %926 = vadd.xlane.f32.xlu0 %v925_v41  ;;  %v1277_v41 = vld [vmem:[%s3283_s9 + $0x10] sm:$0xff]  ;;  %v1278_v18 = vld [vmem:[%s3283_s9 + $0x18] sm:$0xff] }
 0x31c   :  { %v866_v11 = vpop.f32.mrb[20].mxu1  ;;  %v928_v35 = vadd.f32 %v2819_v50, %v2816_v46 }
 0x31d   :  { %v2824_v56 = vadd.f32 %v866_v11, %v2738_v57  ;;  %v868_v52 = vpop.f32.mrb[21].mxu1  ;;  %v1295_v11 = vld [vmem:[%s3283_s9 + $0xa0] sm:$0xff] }
 0x31e   :  { %v2827_v26 = vadd.f32 %v868_v52, %v2741_v27  ;;  %929 = vadd.xlane.f32.xlu1 %v928_v35  ;;  %v1296_v35 = vld [vmem:[%s3283_s9 + $0xa8] sm:$0xff]  ;;  %v1777_v52 = vpack.c.bf16 %v1278_v18, %v1277_v41 }
 0x320   :  { %v872_v24 = vpop.f32.mrb[22].mxu1  ;;  %v931_v45 = vadd.f32 %v2827_v26, %v2824_v56 }
 0x321   :  { %v2832_v49 = vadd.f32 %v872_v24, %v2738_v57  ;;  %v874_v20 = vpop.f32.mrb[23].mxu1  ;;  %v1779_v24 = vpack.c.bf16 %v1296_v35, %v1295_v11 }
 0x322   :  { %v2835_v54 = vadd.f32 %v874_v20, %v2741_v27  ;;  %932 = vadd.xlane.f32.xlu0 %v931_v45  ;;  %v1279_v45 = vld [vmem:[%s3283_s9 + $0x20] sm:$0xff]  ;;  %v1280_v20 = vld [vmem:[%s3283_s9 + $0x28] sm:$0xff] }
 0x324   :  { %v878_v1 = vpop.f32.mrb[24].mxu1  ;;  %v934_v30 = vadd.f32 %v2835_v54, %v2832_v49 }
 0x325   :  { %v2840_v5 = vadd.f32 %v878_v1, %v2738_v57  ;;  %v880_v58 = vpop.f32.mrb[25].mxu1  ;;  %v1297_v1 = vld [vmem:[%s3283_s9 + $0xb0] sm:$0xff] }
 0x326   :  { %v2843_v59 = vadd.f32 %v880_v58, %v2741_v27  ;;  %935 = vadd.xlane.f32.xlu1 %v934_v30  ;;  %v1298_v30 = vld [vmem:[%s3283_s9 + $0xb8] sm:$0xff]  ;;  %v1781_v58 = vpack.c.bf16 %v1280_v20, %v1279_v45 }
 0x328   :  { %v884_v8 = vpop.f32.mrb[26].mxu1  ;;  %v937_v29 = vadd.f32 %v2843_v59, %v2840_v5 }
 0x329   :  { %v2848_v44 = vadd.f32 %v884_v8, %v2738_v57  ;;  %v886_v4 = vpop.f32.mrb[27].mxu1  ;;  %v1783_v8 = vpack.c.bf16 %v1298_v30, %v1297_v1 }
 0x32a   :  { %v2851_v34 = vadd.f32 %v886_v4, %v2741_v27  ;;  %938 = vadd.xlane.f32.xlu0 %v937_v29  ;;  %v1281_v29 = vld [vmem:[%s3283_s9 + $0x30] sm:$0xff]  ;;  %v1282_v4 = vld [vmem:[%s3283_s9 + $0x38] sm:$0xff] }
 0x32c   :  { %v890_v40 = vpop.f32.mrb[28].mxu1  ;;  %v940_v12 = vadd.f32 %v2851_v34, %v2848_v44 }
 0x32d   :  { %v2856_v63 = vadd.f32 %v890_v40, %v2738_v57  ;;  %v892_v25 = vpop.f32.mrb[29].mxu1  ;;  %v1299_v40 = vld [vmem:[%s3283_s9 + $0xc0] sm:$0xff] }
 0x32e   :  { %v2859_v23 = vadd.f32 %v892_v25, %v2741_v27  ;;  %941 = vadd.xlane.f32.xlu1 %v940_v12  ;;  %v1300_v12 = vld [vmem:[%s3283_s9 + $0xc8] sm:$0xff]  ;;  %v1785_v25 = vpack.c.bf16 %v1282_v4, %v1281_v29 }
 0x330   :  { %v896_v2 = vpop.f32.mrb[30].mxu1  ;;  %v943_v61 = vadd.f32 %v2859_v23, %v2856_v63 }
 0x331   :  { %v2864_v0 = vadd.f32 %v896_v2, %v2738_v57  ;;  %v898_v17 = vpop.f32.mrb[31].mxu1  ;;  %v1275_v57 = vld [vmem:[%s3283_s9] sm:$0xff]  ;;  %v1787_v2 = vpack.c.bf16 %v1300_v12, %v1299_v40 }
 0x332   :  { %v2867_v16 = vadd.f32 %v898_v17, %v2741_v27  ;;  %944 = vadd.xlane.f32.xlu0 %v943_v61  ;;  %v1276_v27 = vld [vmem:[%s3283_s9 + $0x8] sm:$0xff]  ;;  %v1283_v61 = vld [vmem:[%s3283_s9 + $0x40] sm:$0xff] }
 0x333   :  { %v1773_v43 = vpack.c.bf16 %v1276_v27, %v1275_v57  ;;  %v1284_v17 = vld [vmem:[%s3283_s9 + $0x48] sm:$0xff] }
 0x334   :  { %v946_v13 = vadd.f32 %v2867_v16, %v2864_v0 }
 0x335   :  { %1774 = vmatpush3.bf16.msra.mxu0 %v1773_v43  ;;  %1811 = vmatpush3.bf16.msra.mxu1 %v1773_v43 }
 0x336   :  { %947 = vadd.xlane.f32.xlu1 %v946_v13  ;;  %1776 = vmatprep.subr.bf16.mxu0 %v1775_v3  ;;  %v1789_v13 = vpack.c.bf16 %v1284_v17, %v1283_v61 }
 0x337   :  { %1804 = vmatprep.subr.bf16.mxu1 %v1775_v3 }
 0x339   :  { %1778 = vmatpush3.bf16.msra.mxu0 %v1777_v52  ;;  %1812 = vmatpush3.bf16.msra.mxu1 %v1777_v52 }
 0x33a   :  { %1780 = vmatprep.subr.bf16.mxu0 %v1779_v24  ;;  %1805 = vmatprep.subr.bf16.mxu1 %v1779_v24 }
 0x33d   :  { %1782 = vmatpush3.bf16.msra.mxu0 %v1781_v58  ;;  %1813 = vmatpush3.bf16.msra.mxu1 %v1781_v58 }
 0x33e   :  { %1784 = vmatprep.subr.bf16.mxu0 %v1783_v8  ;;  %1806 = vmatprep.subr.bf16.mxu1 %v1783_v8 }
 0x341   :  { %1786 = vmatpush3.bf16.msra.mxu0 %v1785_v25  ;;  %1814 = vmatpush3.bf16.msra.mxu1 %v1785_v25 }
 0x342   :  { %1788 = vmatprep.subr.bf16.mxu0 %v1787_v2  ;;  %1807 = vmatprep.subr.bf16.mxu1 %v1787_v2 }
 0x345   :  { %1790 = vmatpush3.bf16.msra.mxu0 %v1789_v13  ;;  %1815 = vmatpush3.bf16.msra.mxu1 %v1789_v13 }
 0x387   :  { %v903_v51 = vpop.xlane.xlu0 %902 }
 0x388   :  { %v949_v22 = vmul.f32 0.00390625, %v903_v51 }
 0x38a   :  { %v2932_v57 = vsub.f32 %v2744_v48, %v949_v22  ;;  %v2935_v15 = vsub.f32 %v2747_v55, %v949_v22 }
 0x38b   :  { %v906_v27 = vpop.xlane.xlu1 %905 }
 0x38c   :  { %v950_v21 = vmul.f32 0.00390625, %v906_v27  ;;  %v997_v37 = vmul.f32 %v2932_v57, %v2932_v57  ;;  %v998_v43 = vmul.f32 %v2935_v15, %v2935_v15 }
 0x38e   :  { %v2942_v3 = vsub.f32 %v2752_v9, %v950_v21  ;;  %v2945_v41 = vsub.f32 %v2755_v10, %v950_v21  ;;  %v1029_v18 = vadd.f32 %v998_v43, %v997_v37 }
 0x38f   :  { %v909_v48 = vpop.xlane.xlu0 %908 }
 0x390   :  { %v951_v11 = vmul.f32 0.00390625, %v909_v48  ;;  %1030 = vadd.xlane.f32.xlu0 %v1029_v18  ;;  %v999_v55 = vmul.f32 %v2942_v3, %v2942_v3  ;;  %v1000_v35 = vmul.f32 %v2945_v41, %v2945_v41 }
 0x392   :  { %v2952_v52 = vsub.f32 %v2760_v6, %v951_v11  ;;  %v2955_v24 = vsub.f32 %v2763_v7, %v951_v11  ;;  %v1032_v9 = vadd.f32 %v1000_v35, %v999_v55 }
 0x393   :  { %v912_v45 = vpop.xlane.xlu1 %911 }
 0x394   :  { %v952_v10 = vmul.f32 0.00390625, %v912_v45  ;;  %1033 = vadd.xlane.f32.xlu1 %v1032_v9  ;;  %v1001_v20 = vmul.f32 %v2952_v52, %v2952_v52  ;;  %v1002_v1 = vmul.f32 %v2955_v24, %v2955_v24  ;;  %v1302_v9 = vld [vmem:[%s3283_s9 + $0xd8] sm:$0xff] }
 0x396   :  { %v2962_v30 = vsub.f32 %v2768_v36, %v952_v10  ;;  %v2965_v58 = vsub.f32 %v2771_v14, %v952_v10  ;;  %v1035_v6 = vadd.f32 %v1002_v1, %v1001_v20  ;;  %v1285_v20 = vld [vmem:[%s3283_s9 + $0x50] sm:$0xff]  ;;  %v1286_v1 = vld [vmem:[%s3283_s9 + $0x58] sm:$0xff] }
 0x397   :  { %v915_v8 = vpop.xlane.xlu0 %914 }
 0x398   :  { %v953_v7 = vmul.f32 0.00390625, %v915_v8  ;;  %1036 = vadd.xlane.f32.xlu0 %v1035_v6  ;;  %v1003_v29 = vmul.f32 %v2962_v30, %v2962_v30  ;;  %v1004_v4 = vmul.f32 %v2965_v58, %v2965_v58  ;;  %v1793_v6 = vpack.c.bf16 %v1286_v1, %v1285_v20 }
 0x39a   :  { %v2972_v40 = vsub.f32 %v2776_v62, %v953_v7  ;;  %v2975_v12 = vsub.f32 %v2779_v19, %v953_v7  ;;  %v1038_v36 = vadd.f32 %v1004_v4, %v1003_v29 }
 0x39b   :  { %v918_v25 = vpop.xlane.xlu1 %917 }
 0x39c   :  { %v954_v14 = vmul.f32 0.00390625, %v918_v25  ;;  %1039 = vadd.xlane.f32.xlu1 %v1038_v36  ;;  %v1005_v2 = vmul.f32 %v2972_v40, %v2972_v40  ;;  %v1006_v61 = vmul.f32 %v2975_v12, %v2975_v12  ;;  %v1303_v36 = vld [vmem:[%s3283_s9 + $0xe0] sm:$0xff]  ;;  %v1304_v25 = vld [vmem:[%s3283_s9 + $0xe8] sm:$0xff] }
 0x39e   :  { %v2982_v17 = vsub.f32 %v2784_v60, %v954_v14  ;;  %v2985_v13 = vsub.f32 %v2787_v39, %v954_v14  ;;  %v1041_v62 = vadd.f32 %v1006_v61, %v1005_v2  ;;  %v1795_v2 = vpack.c.bf16 %v1304_v25, %v1303_v36  ;;  %v1287_v61 = vld [vmem:[%s3283_s9 + $0x60] sm:$0xff] }
 0x39f   :  { %v921_v51 = vpop.xlane.xlu0 %920 }
 0x3a0   :  { %v955_v19 = vmul.f32 0.00390625, %v921_v51  ;;  %1042 = vadd.xlane.f32.xlu0 %v1041_v62  ;;  %v1007_v22 = vmul.f32 %v2982_v17, %v2982_v17  ;;  %v1008_v27 = vmul.f32 %v2985_v13, %v2985_v13  ;;  %v1288_v62 = vld [vmem:[%s3283_s9 + $0x68] sm:$0xff] }
 0x3a1   :  { %v1797_v51 = vpack.c.bf16 %v1288_v62, %v1287_v61 }
 0x3a2   :  { %v2992_v21 = vsub.f32 %v2792_v53, %v955_v19  ;;  %v2995_v37 = vsub.f32 %v2795_v42, %v955_v19  ;;  %v1044_v60 = vadd.f32 %v1008_v27, %v1007_v22  ;;  %v1301_v42 = vld [vmem:[%s3283_s9 + $0xd0] sm:$0xff] }
 0x3a3   :  { %v924_v43 = vpop.xlane.xlu1 %923 }
 0x3a4   :  { %v956_v39 = vmul.f32 0.00390625, %v924_v43  ;;  %1045 = vadd.xlane.f32.xlu1 %v1044_v60  ;;  %v1009_v18 = vmul.f32 %v2992_v21, %v2992_v21  ;;  %v1010_v48 = vmul.f32 %v2995_v37, %v2995_v37  ;;  %v1305_v43 = vld [vmem:[%s3283_s9 + $0xf0] sm:$0xff] }
 0x3a6   :  { %v3002_v11 = vsub.f32 %v2800_v28, %v956_v39  ;;  %v3005_v55 = vsub.f32 %v2803_v32, %v956_v39  ;;  %v1047_v53 = vadd.f32 %v1010_v48, %v1009_v18  ;;  %v1791_v32 = vpack.c.bf16 %v1302_v9, %v1301_v42  ;;  %v1306_v39 = vld [vmem:[%s3283_s9 + $0xf8] sm:$0xff] }
 0x3a7   :  { %v927_v35 = vpop.xlane.xlu0 %926  ;;  %v1799_v48 = vpack.c.bf16 %v1306_v39, %v1305_v43 }
 0x3a8   :  { %v957_v45 = vmul.f32 0.00390625, %v927_v35  ;;  %1048 = vadd.xlane.f32.xlu0 %v1047_v53  ;;  %v1011_v10 = vmul.f32 %v3002_v11, %v3002_v11  ;;  %v1012_v28 = vmul.f32 %v3005_v55, %v3005_v55  ;;  %1792 = vmatprep.subr.bf16.mxu0 %v1791_v32  ;;  %v1289_v53 = vld [vmem:[%s3283_s9 + $0x70] sm:$0xff]  ;;  %v1290_v35 = vld [vmem:[%s3283_s9 + $0x78] sm:$0xff] }
 0x3a9   :  { %1808 = vmatprep.subr.bf16.mxu1 %v1791_v32  ;;  %1794 = vmatpush3.bf16.msra.mxu0 %v1793_v6  ;;  %v1801_v42 = vpack.c.bf16 %v1290_v35, %v1289_v53 }
 0x3aa   :  { %v3024_v8 = vsub.f32 %v2808_v38, %v957_v45  ;;  %v3027_v7 = vsub.f32 %v2811_v47, %v957_v45  ;;  %v1050_v29 = vadd.f32 %v1012_v28, %v1011_v10  ;;  %1816 = vmatpush3.bf16.msra.mxu1 %v1793_v6  ;;  %1796 = vmatprep.subr.bf16.mxu0 %v1795_v2 }
 0x3ab   :  { %v930_v4 = vpop.xlane.xlu1 %929  ;;  %1809 = vmatprep.subr.bf16.mxu1 %v1795_v2 }
 0x3ac   :  { %v958_v14 = vmul.f32 0.00390625, %v930_v4  ;;  %1051 = vadd.xlane.f32.xlu1 %v1050_v29  ;;  %v1013_v38 = vmul.f32 %v3024_v8, %v3024_v8  ;;  %v1014_v47 = vmul.f32 %v3027_v7, %v3027_v7 }
 0x3ad   :  { %1798 = vmatpush3.bf16.msra.mxu0 %v1797_v51 }
 0x3ae   :  { %v3046_v19 = vsub.f32 %v2816_v46, %v958_v14  ;;  %v3049_v22 = vsub.f32 %v2819_v50, %v958_v14  ;;  %v1053_v27 = vadd.f32 %v1014_v47, %v1013_v38  ;;  %1817 = vmatpush3.bf16.msra.mxu1 %v1797_v51  ;;  %1800 = vmatprep.subr.bf16.mxu0 %v1799_v48 }
 0x3af   :  { %v933_v60 = vpop.xlane.xlu0 %932  ;;  %1810 = vmatprep.subr.bf16.mxu1 %v1799_v48 }
 0x3b0   :  { %v959_v18 = vmul.f32 0.00390625, %v933_v60  ;;  %1054 = vadd.xlane.f32.xlu0 %v1053_v27  ;;  %v1015_v46 = vmul.f32 %v3046_v19, %v3046_v19  ;;  %v1016_v50 = vmul.f32 %v3049_v22, %v3049_v22 }
 0x3b1   :  { %1802 = vmatpush3.bf16.msra.mxu0 %v1801_v42 }
 0x3b2   :  { %v3068_v9 = vsub.f32 %v2824_v56, %v959_v18  ;;  %v3071_v45 = vsub.f32 %v2827_v26, %v959_v18  ;;  %v1056_v10 = vadd.f32 %v1016_v50, %v1015_v46  ;;  %1818 = vmatpush3.bf16.msra.mxu1 %v1801_v42 }
 0x3b3   :  { %v936_v28 = vpop.xlane.xlu1 %935 }
 0x3b4   :  { %v960_v32 = vmul.f32 0.00390625, %v936_v28  ;;  %1057 = vadd.xlane.f32.xlu1 %v1056_v10  ;;  %v1017_v20 = vmul.f32 %v3068_v9, %v3068_v9  ;;  %v1018_v1 = vmul.f32 %v3071_v45, %v3071_v45 }
 0x3b6   :  { %v3078_v56 = vsub.f32 %v2832_v49, %v960_v32  ;;  %v3081_v26 = vsub.f32 %v2835_v54, %v960_v32  ;;  %v1059_v6 = vadd.f32 %v1018_v1, %v1017_v20 }
 0x3b7   :  { %v939_v29 = vpop.xlane.xlu0 %938 }
 0x3b8   :  { %v961_v4 = vmul.f32 0.00390625, %v939_v29  ;;  %1060 = vadd.xlane.f32.xlu0 %v1059_v6  ;;  %v1019_v36 = vmul.f32 %v3078_v56, %v3078_v56  ;;  %v1020_v25 = vmul.f32 %v3081_v26, %v3081_v26 }
 0x3ba   :  { %v3088_v14 = vsub.f32 %v2840_v5, %v961_v4  ;;  %v3091_v38 = vsub.f32 %v2843_v59, %v961_v4  ;;  %v1062_v49 = vadd.f32 %v1020_v25, %v1019_v36  ;;  %v43_v36 = vld [vmem:[%s3281_s7] sm:$0x3] }
 0x3bb   :  { %v942_v47 = vpop.xlane.xlu1 %941 }
 0x3bc   :  { %v962_v54 = vmul.f32 0.00390625, %v942_v47  ;;  %1063 = vadd.xlane.f32.xlu1 %v1062_v49  ;;  %v1021_v2 = vmul.f32 %v3088_v14, %v3088_v14  ;;  %v1022_v61 = vmul.f32 %v3091_v38, %v3091_v38  ;;  %v44_v47 = vld [vmem:[%s3282_s8] sm:$0x3] }
 0x3be   :  { %v3098_v62 = vsub.f32 %v2848_v44, %v962_v54  ;;  %v3101_v51 = vsub.f32 %v2851_v34, %v962_v54  ;;  %v1065_v5 = vadd.f32 %v1022_v61, %v1021_v2  ;;  %v3134_v54 = vrot.slane %v43_v36, %v2127_v31 }
 0x3bf   :  { %v945_v27 = vpop.xlane.xlu0 %944  ;;  %v3137_v2 = vrot.slane %v43_v36, %v2132_v33 }
 0x3c0   :  { %v963_v59 = vmul.f32 0.00390625, %v945_v27  ;;  %1066 = vadd.xlane.f32.xlu0 %v1065_v5  ;;  %v1023_v60 = vmul.f32 %v3098_v62, %v3098_v62  ;;  %v1024_v43 = vmul.f32 %v3101_v51, %v3101_v51 }
 0x3c2   :  { %v3108_v39 = vsub.f32 %v2856_v63, %v963_v59  ;;  %v3111_v18 = vsub.f32 %v2859_v23, %v963_v59  ;;  %v1068_v44 = vadd.f32 %v1024_v43, %v1023_v60  ;;  %v3142_v43 = vrot.slane %v44_v47, %v2127_v31 }
 0x3c3   :  { %v948_v46 = vpop.xlane.xlu1 %947 }
 0x3c4   :  { %v964_v34 = vmul.f32 0.00390625, %v948_v46  ;;  %1069 = vadd.xlane.f32.xlu1 %v1068_v44  ;;  %v1025_v50 = vmul.f32 %v3108_v39, %v3108_v39  ;;  %v1026_v48 = vmul.f32 %v3111_v18, %v3111_v18  ;;  %v3145_v44 = vrot.slane %v44_v47, %v2132_v33 }
 0x3c6   :  { %v3118_v53 = vsub.f32 %v2864_v0, %v964_v34  ;;  %v3121_v35 = vsub.f32 %v2867_v16, %v964_v34  ;;  %v1071_v63 = vadd.f32 %v1026_v48, %v1025_v50 }
 0x3c8   :  { %1072 = vadd.xlane.f32.xlu0 %v1071_v63  ;;  %v1027_v23 = vmul.f32 %v3118_v53, %v3118_v53  ;;  %v1028_v42 = vmul.f32 %v3121_v35, %v3121_v35 }
 0x3ca   :  { %v1074_v10 = vadd.f32 %v1028_v42, %v1027_v23 }
 0x3cc   :  { %1075 = vadd.xlane.f32.xlu1 %v1074_v10 }
 0x41d   :  { %v1031_v28 = vpop.xlane.xlu0 %1030 }
 0x41e   :  { %v1077_v32 = vmul.f32 0.00390625, %v1031_v28 }
 0x420   :  { %v1093_v20 = vadd.f32 1e-05, %v1077_v32 }
 0x421   :  { %v1034_v1 = vpop.xlane.xlu1 %1033 }
 0x422   :  { %1855 = vrsqrt.f32 %v1093_v20  ;;  %v1078_v0 = vmul.f32 0.00390625, %v1034_v1 }
 0x424   :  { %v1094_v6 = vadd.f32 1e-05, %v1078_v0 }
 0x425   :  { %v1037_v29 = vpop.xlane.xlu0 %1036 }
 0x426   :  { %1857 = vrsqrt.f32 %v1094_v6  ;;  %v1079_v16 = vmul.f32 0.00390625, %v1037_v29 }
 0x428   :  { %v1095_v4 = vadd.f32 1e-05, %v1079_v16 }
 0x429   :  { %v1040_v25 = vpop.xlane.xlu1 %1039 }
 0x42a   :  { %1859 = vrsqrt.f32 %v1095_v4  ;;  %v1080_v49 = vmul.f32 0.00390625, %v1040_v25 }
 0x42c   :  { %v1856_v61 = vpop.eup %1855  ;;  %v1096_v5 = vadd.f32 1e-05, %v1080_v49 }
 0x42d   :  { %v1125_v27 = vmul.f32 %v1856_v61, %v2932_v57  ;;  %v1043_v59 = vpop.xlane.xlu0 %1042  ;;  %v1126_v60 = vmul.f32 %v1856_v61, %v2935_v15 }
 0x42e   :  { %1861 = vrsqrt.f32 %v1096_v5  ;;  %v1081_v46 = vmul.f32 0.00390625, %v1043_v59 }
 0x42f   :  { %v1169_v34 = vmul.f32 %v3137_v2, %v1126_v60  ;;  %v1168_v50 = vmul.f32 %v3134_v54, %v1125_v27 }
 0x430   :  { %v1858_v48 = vpop.eup %1857  ;;  %v1097_v63 = vadd.f32 1e-05, %v1081_v46 }
 0x431   :  { %v1046_v23 = vpop.xlane.xlu1 %1045  ;;  %v1212_v57 = vadd.f32 %v3145_v44, %v1169_v34  ;;  %v1211_v42 = vadd.f32 %v3142_v43, %v1168_v50  ;;  %v1128_v15 = vmul.f32 %v1858_v48, %v2945_v41  ;;  %v1127_v31 = vmul.f32 %v1858_v48, %v2942_v3 }
 0x432   :  { %1863 = vrsqrt.f32 %v1097_v63  ;;  %v1082_v33 = vmul.f32 0.00390625, %v1046_v23 }
 0x433   :  { %v1244_v10 = vmax.f32 %v1212_v57, 0.0  ;;  %v1243_v28 = vmax.f32 %v1211_v42, 0.0  ;;  %v1171_v32 = vmul.f32 %v3137_v2, %v1128_v15  ;;  %v1170_v20 = vmul.f32 %v3134_v54, %v1127_v31 }
 0x434   :  { %v1860_v1 = vpop.eup %1859  ;;  %v1098_v0 = vadd.f32 1e-05, %v1082_v33 }
 0x435   :  { %1377 = vmatprep.mubr.f32.mxu0 %v1244_v10  ;;  %v1049_v6 = vpop.xlane.xlu0 %1048  ;;  %v1214_v29 = vadd.f32 %v3145_v44, %v1171_v32  ;;  %v1213_v16 = vadd.f32 %v3142_v43, %v1170_v20  ;;  %v1130_v41 = vmul.f32 %v1860_v1, %v2955_v24  ;;  %v1129_v3 = vmul.f32 %v1860_v1, %v2952_v52 }
 0x436   :  { %1865 = vrsqrt.f32 %v1098_v0  ;;  %v1083_v4 = vmul.f32 0.00390625, %v1049_v6  ;;  %1378 = vmatmul.mubr.f32.vlgmr.msra.gmra.mrb[32].mxu0 %v1243_v28 }
 0x437   :  { %v1246_v36 = vmax.f32 %v1214_v29, 0.0  ;;  %v1245_v25 = vmax.f32 %v1213_v16, 0.0  ;;  %v1173_v49 = vmul.f32 %v3137_v2, %v1130_v41  ;;  %v1172_v47 = vmul.f32 %v3134_v54, %v1129_v3 }
 0x438   :  { %v1862_v61 = vpop.eup %1861  ;;  %v1099_v5 = vadd.f32 1e-05, %v1083_v4 }
 0x439   :  { %v1052_v27 = vpop.xlane.xlu1 %1051  ;;  %1382 = vmatprep.mubr.f32.mxu0 %v1246_v36  ;;  %v1216_v59 = vadd.f32 %v3145_v44, %v1173_v49  ;;  %v1215_v60 = vadd.f32 %v3142_v43, %v1172_v47  ;;  %v1132_v24 = vmul.f32 %v1862_v61, %v2965_v58  ;;  %v1131_v52 = vmul.f32 %v1862_v61, %v2962_v30 }
 0x43a   :  { %1867 = vrsqrt.f32 %v1099_v5  ;;  %v1084_v46 = vmul.f32 0.00390625, %v1052_v27  ;;  %1383 = vmatmul.mubr.f32.gmra.mrb[34].mxu0 %v1245_v25 }
 0x43b   :  { %v1248_v34 = vmax.f32 %v1216_v59, 0.0  ;;  %v1247_v50 = vmax.f32 %v1215_v60, 0.0  ;;  %v1175_v48 = vmul.f32 %v3137_v2, %v1132_v24  ;;  %v1174_v63 = vmul.f32 %v3134_v54, %v1131_v52 }
 0x43c   :  { %v1864_v23 = vpop.eup %1863  ;;  %v1100_v57 = vadd.f32 1e-05, %v1084_v46 }
 0x43d   :  { %1387 = vmatprep.mubr.f32.mxu0 %v1248_v34  ;;  %v1055_v42 = vpop.xlane.xlu0 %1054  ;;  %v1218_v15 = vadd.f32 %v3145_v44, %v1175_v48  ;;  %v1217_v31 = vadd.f32 %v3142_v43, %v1174_v63  ;;  %v1134_v58 = vmul.f32 %v1864_v23, %v2975_v12  ;;  %v1133_v30 = vmul.f32 %v1864_v23, %v2972_v40 }
 0x43e   :  { %1869 = vrsqrt.f32 %v1100_v57  ;;  %v1085_v33 = vmul.f32 0.00390625, %v1055_v42  ;;  %1388 = vmatmul.mubr.f32.gmra.mrb[36].mxu0 %v1247_v50 }
 0x43f   :  { %v1250_v10 = vmax.f32 %v1218_v15, 0.0  ;;  %v1249_v28 = vmax.f32 %v1217_v31, 0.0  ;;  %v1177_v32 = vmul.f32 %v3137_v2, %v1134_v58  ;;  %v1176_v20 = vmul.f32 %v3134_v54, %v1133_v30 }
 0x440   :  { %v1866_v1 = vpop.eup %1865  ;;  %v1101_v0 = vadd.f32 1e-05, %v1085_v33 }
 0x441   :  { %v1058_v6 = vpop.xlane.xlu1 %1057  ;;  %1392 = vmatprep.mubr.f32.mxu0 %v1250_v10  ;;  %v1220_v29 = vadd.f32 %v3145_v44, %v1177_v32  ;;  %v1219_v16 = vadd.f32 %v3142_v43, %v1176_v20  ;;  %v1136_v12 = vmul.f32 %v1866_v1, %v2985_v13  ;;  %v1135_v40 = vmul.f32 %v1866_v1, %v2982_v17 }
 0x442   :  { %1871 = vrsqrt.f32 %v1101_v0  ;;  %v1086_v41 = vmul.f32 0.00390625, %v1058_v6  ;;  %1393 = vmatmul.mubr.f32.gmra.mrb[38].mxu0 %v1249_v28 }
 0x443   :  { %v1252_v3 = vmax.f32 %v1220_v29, 0.0  ;;  %v1251_v4 = vmax.f32 %v1219_v16, 0.0  ;;  %v1179_v36 = vmul.f32 %v3137_v2, %v1136_v12  ;;  %v1178_v25 = vmul.f32 %v3134_v54, %v1135_v40 }
 0x444   :  { %v1868_v49 = vpop.eup %1867  ;;  %v1102_v47 = vadd.f32 1e-05, %v1086_v41 }
 0x445   :  { %1397 = vmatprep.mubr.f32.mxu0 %v1252_v3  ;;  %v1061_v61 = vpop.xlane.xlu0 %1060  ;;  %v1222_v5 = vadd.f32 %v3145_v44, %v1179_v36  ;;  %v1221_v27 = vadd.f32 %v3142_v43, %v1178_v25  ;;  %v1138_v13 = vmul.f32 %v1868_v49, %v2995_v37  ;;  %v1137_v17 = vmul.f32 %v1868_v49, %v2992_v21 }
 0x446   :  { %1873 = vrsqrt.f32 %v1102_v47  ;;  %v1087_v59 = vmul.f32 0.00390625, %v1061_v61  ;;  %1398 = vmatmul.mubr.f32.gmra.mrb[40].mxu0 %v1251_v4 }
 0x447   :  { %v1254_v60 = vmax.f32 %v1222_v5, 0.0  ;;  %v1253_v24 = vmax.f32 %v1221_v27, 0.0  ;;  %v1181_v52 = vmul.f32 %v3137_v2, %v1138_v13  ;;  %v1180_v46 = vmul.f32 %v3134_v54, %v1137_v17 }
 0x448   :  { %v1870_v34 = vpop.eup %1869  ;;  %v1103_v50 = vadd.f32 1e-05, %v1087_v59 }
 0x449   :  { %v1064_v48 = vpop.xlane.xlu1 %1063  ;;  %1402 = vmatprep.mubr.f32.mxu0 %v1254_v60  ;;  %v1224_v63 = vadd.f32 %v3145_v44, %v1181_v52  ;;  %v1223_v23 = vadd.f32 %v3142_v43, %v1180_v46  ;;  %v1140_v37 = vmul.f32 %v1870_v34, %v3005_v55  ;;  %v1139_v21 = vmul.f32 %v1870_v34, %v3002_v11 }
 0x44a   :  { %1875 = vrsqrt.f32 %v1103_v50  ;;  %v1088_v57 = vmul.f32 0.00390625, %v1064_v48  ;;  %1403 = vmatmul.mubr.f32.gmra.mrb[42].mxu0 %v1253_v24 }
 0x44b   :  { %v1256_v42 = vmax.f32 %v1224_v63, 0.0  ;;  %v1255_v15 = vmax.f32 %v1223_v23, 0.0  ;;  %v1183_v31 = vmul.f32 %v3137_v2, %v1140_v37  ;;  %v1182_v58 = vmul.f32 %v3134_v54, %v1139_v21 }
 0x44c   :  { %v1872_v30 = vpop.eup %1871  ;;  %v1104_v33 = vadd.f32 1e-05, %v1088_v57 }
 0x44d   :  { %1407 = vmatprep.mubr.f32.mxu0 %v1256_v42  ;;  %v1067_v10 = vpop.xlane.xlu0 %1066  ;;  %v1226_v28 = vadd.f32 %v3145_v44, %v1183_v31  ;;  %v1225_v32 = vadd.f32 %v3142_v43, %v1182_v58  ;;  %v1142_v55 = vmul.f32 %v1872_v30, %v3027_v7  ;;  %v1141_v11 = vmul.f32 %v1872_v30, %v3024_v8 }
 0x44e   :  { %1877 = vrsqrt.f32 %v1104_v33  ;;  %v1089_v20 = vmul.f32 0.00390625, %v1067_v10  ;;  %1408 = vmatmul.mubr.f32.gmra.mrb[44].mxu0 %v1255_v15 }
 0x44f   :  { %v1258_v1 = vmax.f32 %v1226_v28, 0.0  ;;  %v1257_v0 = vmax.f32 %v1225_v32, 0.0  ;;  %v1185_v6 = vmul.f32 %v3137_v2, %v1142_v55  ;;  %v1184_v29 = vmul.f32 %v3134_v54, %v1141_v11 }
 0x450   :  { %v1874_v16 = vpop.eup %1873  ;;  %v1105_v12 = vadd.f32 1e-05, %v1089_v20 }
 0x451   :  { %v1070_v40 = vpop.xlane.xlu1 %1069  ;;  %1412 = vmatprep.mubr.f32.mxu0 %v1258_v1  ;;  %v1228_v41 = vadd.f32 %v3145_v44, %v1185_v6  ;;  %v1227_v3 = vadd.f32 %v3142_v43, %v1184_v29  ;;  %v1144_v7 = vmul.f32 %v1874_v16, %v3049_v22  ;;  %v1143_v8 = vmul.f32 %v1874_v16, %v3046_v19 }
 0x452   :  { %1879 = vrsqrt.f32 %v1105_v12  ;;  %v1090_v4 = vmul.f32 0.00390625, %v1070_v40  ;;  %1413 = vmatmul.mubr.f32.gmra.mrb[46].mxu0 %v1257_v0 }
 0x453   :  { %v1260_v36 = vmax.f32 %v1228_v41, 0.0  ;;  %v1259_v25 = vmax.f32 %v1227_v3, 0.0  ;;  %v1187_v49 = vmul.f32 %v3137_v2, %v1144_v7  ;;  %v1186_v47 = vmul.f32 %v3134_v54, %v1143_v8 }
 0x454   :  { %v1876_v61 = vpop.eup %1875  ;;  %v1106_v5 = vadd.f32 1e-05, %v1090_v4 }
 0x455   :  { %1417 = vmatprep.mubr.f32.mxu0 %v1260_v36  ;;  %v1073_v27 = vpop.xlane.xlu0 %1072  ;;  %v1230_v13 = vadd.f32 %v3145_v44, %v1187_v49  ;;  %v1229_v17 = vadd.f32 %v3142_v43, %v1186_v47  ;;  %v1146_v22 = vmul.f32 %v1876_v61, %v3071_v45  ;;  %v1145_v19 = vmul.f32 %v1876_v61, %v3068_v9 }
 0x456   :  { %1881 = vrsqrt.f32 %v1106_v5  ;;  %v1091_v59 = vmul.f32 0.00390625, %v1073_v27  ;;  %1418 = vmatmul.mubr.f32.gmra.mrb[48].mxu0 %v1259_v25 }
 0x457   :  { %v1262_v60 = vmax.f32 %v1230_v13, 0.0  ;;  %v1261_v24 = vmax.f32 %v1229_v17, 0.0  ;;  %v1189_v52 = vmul.f32 %v3137_v2, %v1146_v22  ;;  %v1188_v46 = vmul.f32 %v3134_v54, %v1145_v19 }
 0x458   :  { %v1878_v34 = vpop.eup %1877  ;;  %v1107_v50 = vadd.f32 1e-05, %v1091_v59 }
 0x459   :  { %v1076_v48 = vpop.xlane.xlu1 %1075  ;;  %1422 = vmatprep.mubr.f32.mxu0 %v1262_v60  ;;  %v1232_v63 = vadd.f32 %v3145_v44, %v1189_v52  ;;  %v1231_v23 = vadd.f32 %v3142_v43, %v1188_v46  ;;  %v1148_v45 = vmul.f32 %v1878_v34, %v3081_v26  ;;  %v1147_v9 = vmul.f32 %v1878_v34, %v3078_v56 }
 0x45a   :  { %1883 = vrsqrt.f32 %v1107_v50  ;;  %v1092_v37 = vmul.f32 0.00390625, %v1076_v48  ;;  %1423 = vmatmul.mubr.f32.gmra.mrb[50].mxu0 %v1261_v24 }
 0x45b   :  { %v1264_v21 = vmax.f32 %v1232_v63, 0.0  ;;  %v1263_v57 = vmax.f32 %v1231_v23, 0.0  ;;  %v1191_v42 = vmul.f32 %v3137_v2, %v1148_v45  ;;  %v1190_v15 = vmul.f32 %v3134_v54, %v1147_v9 }
 0x45c   :  { %v1880_v31 = vpop.eup %1879  ;;  %v1108_v58 = vadd.f32 1e-05, %v1092_v37 }
 0x45d   :  { %1427 = vmatprep.mubr.f32.mxu0 %v1264_v21  ;;  %v1234_v30 = vadd.f32 %v3145_v44, %v1191_v42  ;;  %v1233_v33 = vadd.f32 %v3142_v43, %v1190_v15  ;;  %v1150_v26 = vmul.f32 %v1880_v31, %v3091_v38  ;;  %v1149_v56 = vmul.f32 %v1880_v31, %v3088_v14 }
 0x45e   :  { %1885 = vrsqrt.f32 %v1108_v58  ;;  %1428 = vmatmul.mubr.f32.gmra.mrb[52].mxu0 %v1263_v57 }
 0x45f   :  { %v1266_v10 = vmax.f32 %v1234_v30, 0.0  ;;  %v1265_v28 = vmax.f32 %v1233_v33, 0.0  ;;  %v1193_v32 = vmul.f32 %v3137_v2, %v1150_v26  ;;  %v1192_v55 = vmul.f32 %v3134_v54, %v1149_v56 }
 0x460   :  { %v1882_v11 = vpop.eup %1881 }
 0x461   :  { %1432 = vmatprep.mubr.f32.mxu0 %v1266_v10  ;;  %v1236_v20 = vadd.f32 %v3145_v44, %v1193_v32  ;;  %v1235_v1 = vadd.f32 %v3142_v43, %v1192_v55  ;;  %v1152_v0 = vmul.f32 %v1882_v11, %v3101_v51  ;;  %v1151_v38 = vmul.f32 %v1882_v11, %v3098_v62 }
 0x462   :  { %1433 = vmatmul.mubr.f32.gmra.mrb[54].mxu0 %v1265_v28 }
 0x463   :  { %v1268_v14 = vmax.f32 %v1236_v20, 0.0  ;;  %v1267_v6 = vmax.f32 %v1235_v1, 0.0  ;;  %v1195_v29 = vmul.f32 %v3137_v2, %v1152_v0  ;;  %v1194_v16 = vmul.f32 %v3134_v54, %v1151_v38 }
 0x464   :  { %v1884_v12 = vpop.eup %1883 }
 0x465   :  { %1437 = vmatprep.mubr.f32.mxu0 %v1268_v14  ;;  %v1238_v40 = vadd.f32 %v3145_v44, %v1195_v29  ;;  %v1237_v41 = vadd.f32 %v3142_v43, %v1194_v16  ;;  %v1154_v3 = vmul.f32 %v1884_v12, %v3111_v18  ;;  %v1153_v7 = vmul.f32 %v1884_v12, %v3108_v39 }
 0x466   :  { %1438 = vmatmul.mubr.f32.gmra.mrb[56].mxu0 %v1267_v6 }
 0x467   :  { %v1270_v51 = vmax.f32 %v1238_v40, 0.0  ;;  %v1269_v62 = vmax.f32 %v1237_v41, 0.0  ;;  %v1197_v8 = vmul.f32 %v3137_v2, %v1154_v3  ;;  %v1196_v4 = vmul.f32 %v3134_v54, %v1153_v7 }
 0x468   :  { %v1886_v36 = vpop.eup %1885 }
 0x469   :  { %v1155_v25 = vmul.f32 %v1886_v36, %v3118_v53  ;;  %1442 = vmatprep.mubr.f32.mxu0 %v1270_v51  ;;  %v1240_v49 = vadd.f32 %v3145_v44, %v1197_v8  ;;  %v1239_v47 = vadd.f32 %v3142_v43, %v1196_v4  ;;  %v1156_v61 = vmul.f32 %v1886_v36, %v3121_v35  ;;  %v3244_v35 = vld [vmem:[%s3284_s10] ss:$0 sm:$0xff] }
 0x46a   :  { %1443 = vmatmul.mubr.f32.gmra.mrb[58].mxu0 %v1269_v62 }
 0x46b   :  { %v1198_v39 = vmul.f32 %v3134_v54, %v1155_v25  ;;  %v1272_v18 = vmax.f32 %v1240_v49, 0.0  ;;  %v1271_v5 = vmax.f32 %v1239_v47, 0.0  ;;  %v1199_v27 = vmul.f32 %v3137_v2, %v1156_v61 }
 0x46d   :  { %1447 = vmatprep.mubr.f32.mxu0 %v1272_v18  ;;  %v1242_v13 = vadd.f32 %v3145_v44, %v1199_v27  ;;  %v1241_v17 = vadd.f32 %v3142_v43, %v1198_v39 }
 0x46e   :  { %1448 = vmatmul.mubr.f32.gmra.mrb[60].mxu0 %v1271_v5 }
 0x46f   :  { %v1274_v53 = vmax.f32 %v1242_v13, 0.0  ;;  %v1273_v22 = vmax.f32 %v1241_v17, 0.0 }
 0x471   :  { %1452 = vmatprep.mubr.f32.mxu1 %v1274_v53 }
 0x472   :  { %1453 = vmatmul.mubr.f32.vlgmr.msra.gmra.mrb[32].mxu1 %v1273_v22 }
 0x509   :  { %v1651_v19 = vpop.f32.mrb[32].mxu0 }
 0x50a   :  { %v1652_v54 = vpop.f32.mrb[33].mxu0 }
 0x50b   :  { %v1653_v59 = vadd.f32 %v1652_v54, %v1651_v19 }
 0x50d   :  { %v1380_v2 = vadd.f32 %v1653_v59, %v3244_v35  ;;  %v1654_v60 = vpop.f32.mrb[34].mxu0 }
 0x50e   :  { %v1655_v24 = vpop.f32.mrb[35].mxu0 }
 0x50f   :  { %v1603_v44 = vmul.f32 -1.442695, %v1380_v2  ;;  %v1656_v52 = vadd.f32 %v1655_v24, %v1654_v60 }
 0x511   :  { %1887 = vpow2.f32 %v1603_v44  ;;  %v1385_v43 = vadd.f32 %v1656_v52, %v3244_v35  ;;  %v1657_v46 = vpop.f32.mrb[36].mxu0 }
 0x512   :  { %v1658_v34 = vpop.f32.mrb[37].mxu0 }
 0x513   :  { %v1604_v50 = vmul.f32 -1.442695, %v1385_v43  ;;  %v1659_v48 = vadd.f32 %v1658_v34, %v1657_v46 }
 0x515   :  { %1889 = vpow2.f32 %v1604_v50  ;;  %v1390_v63 = vadd.f32 %v1659_v48, %v3244_v35  ;;  %v1660_v23 = vpop.f32.mrb[38].mxu0 }
 0x516   :  { %v1661_v45 = vpop.f32.mrb[39].mxu0 }
 0x517   :  { %v1605_v9 = vmul.f32 -1.442695, %v1390_v63  ;;  %v1662_v37 = vadd.f32 %v1661_v45, %v1660_v23 }
 0x519   :  { %1891 = vpow2.f32 %v1605_v9  ;;  %v1395_v21 = vadd.f32 %v1662_v37, %v3244_v35  ;;  %v1663_v57 = vpop.f32.mrb[40].mxu0 }
 0x51a   :  { %v1664_v42 = vpop.f32.mrb[41].mxu0 }
 0x51b   :  { %v1888_v15 = vpop.eup %1887  ;;  %v1606_v31 = vmul.f32 -1.442695, %v1395_v21  ;;  %v1665_v58 = vadd.f32 %v1664_v42, %v1663_v57 }
 0x51c   :  { %v1506_v30 = vadd.f32 1.0, %v1888_v15 }
 0x51d   :  { %1893 = vpow2.f32 %v1606_v31  ;;  %v1400_v33 = vadd.f32 %v1665_v58, %v3244_v35  ;;  %v1666_v26 = vpop.f32.mrb[42].mxu0 }
 0x51e   :  { %1895 = vrcp.f32 %v1506_v30  ;;  %v1667_v56 = vpop.f32.mrb[43].mxu0 }
 0x51f   :  { %v1890_v10 = vpop.eup %1889  ;;  %v1607_v28 = vmul.f32 -1.442695, %v1400_v33  ;;  %v1668_v32 = vadd.f32 %v1667_v56, %v1666_v26 }
 0x520   :  { %v1507_v55 = vadd.f32 1.0, %v1890_v10 }
 0x521   :  { %1897 = vpow2.f32 %v1607_v28  ;;  %v1405_v11 = vadd.f32 %v1668_v32, %v3244_v35  ;;  %v1669_v20 = vpop.f32.mrb[44].mxu0 }
 0x522   :  { %1899 = vrcp.f32 %v1507_v55  ;;  %v1670_v1 = vpop.f32.mrb[45].mxu0 }
 0x523   :  { %v1892_v0 = vpop.eup %1891  ;;  %v1608_v38 = vmul.f32 -1.442695, %v1405_v11  ;;  %v1671_v14 = vadd.f32 %v1670_v1, %v1669_v20 }
 0x524   :  { %v1508_v6 = vadd.f32 1.0, %v1892_v0 }
 0x525   :  { %1901 = vpow2.f32 %v1608_v38  ;;  %v1410_v29 = vadd.f32 %v1671_v14, %v3244_v35  ;;  %v1672_v16 = vpop.f32.mrb[46].mxu0 }
 0x526   :  { %1903 = vrcp.f32 %v1508_v6  ;;  %v1673_v12 = vpop.f32.mrb[47].mxu0 }
 0x527   :  { %v1894_v40 = vpop.eup %1893  ;;  %v1609_v41 = vmul.f32 -1.442695, %v1410_v29  ;;  %v1674_v3 = vadd.f32 %v1673_v12, %v1672_v16 }
 0x528   :  { %v1896_v7 = vpop.eup %1895  ;;  %v1509_v51 = vadd.f32 1.0, %v1894_v40 }
 0x529   :  { %1554 = vst [vmem:[#allocation2] sm:$0xff] %v1896_v7  ;;  %1905 = vpow2.f32 %v1609_v41  ;;  %v1415_v62 = vadd.f32 %v1674_v3, %v3244_v35  ;;  %v1675_v8 = vpop.f32.mrb[48].mxu0 }
 0x52a   :  { %1907 = vrcp.f32 %v1509_v51  ;;  %v1676_v4 = vpop.f32.mrb[49].mxu0 }
 0x52b   :  { %v1898_v36 = vpop.eup %1897  ;;  %v1610_v25 = vmul.f32 -1.442695, %v1415_v62  ;;  %v1677_v49 = vadd.f32 %v1676_v4, %v1675_v8 }
 0x52c   :  { %v1900_v47 = vpop.eup %1899  ;;  %v1510_v61 = vadd.f32 1.0, %v1898_v36 }
 0x52d   :  { %1555 = vst [vmem:[#allocation2 + $0x8] sm:$0xff] %v1900_v47  ;;  %1909 = vpow2.f32 %v1610_v25  ;;  %v1420_v39 = vadd.f32 %v1677_v49, %v3244_v35  ;;  %v1678_v18 = vpop.f32.mrb[50].mxu0 }
 0x52e   :  { %1911 = vrcp.f32 %v1510_v61  ;;  %v1679_v5 = vpop.f32.mrb[51].mxu0 }
 0x52f   :  { %v1902_v27 = vpop.eup %1901  ;;  %v1611_v13 = vmul.f32 -1.442695, %v1420_v39  ;;  %v1680_v17 = vadd.f32 %v1679_v5, %v1678_v18 }
 0x530   :  { %v1904_v53 = vpop.eup %1903  ;;  %v1511_v22 = vadd.f32 1.0, %v1902_v27 }
 0x531   :  { %1556 = vst [vmem:[#allocation2 + $0x10] sm:$0xff] %v1904_v53  ;;  %1913 = vpow2.f32 %v1611_v13  ;;  %v1425_v19 = vadd.f32 %v1680_v17, %v3244_v35  ;;  %v1681_v54 = vpop.f32.mrb[52].mxu0 }
 0x532   :  { %1915 = vrcp.f32 %v1511_v22  ;;  %v1682_v59 = vpop.f32.mrb[53].mxu0 }
 0x533   :  { %v1906_v2 = vpop.eup %1905  ;;  %v1612_v60 = vmul.f32 -1.442695, %v1425_v19  ;;  %v1683_v24 = vadd.f32 %v1682_v59, %v1681_v54 }
 0x534   :  { %v1908_v44 = vpop.eup %1907  ;;  %v1512_v52 = vadd.f32 1.0, %v1906_v2 }
 0x535   :  { %1557 = vst [vmem:[#allocation2 + $0x18] sm:$0xff] %v1908_v44  ;;  %1917 = vpow2.f32 %v1612_v60  ;;  %v1430_v43 = vadd.f32 %v1683_v24, %v3244_v35  ;;  %v1684_v46 = vpop.f32.mrb[54].mxu0 }
 0x536   :  { %1919 = vrcp.f32 %v1512_v52  ;;  %v1685_v34 = vpop.f32.mrb[55].mxu0 }
 0x537   :  { %v1910_v50 = vpop.eup %1909  ;;  %v1613_v48 = vmul.f32 -1.442695, %v1430_v43  ;;  %v1686_v63 = vadd.f32 %v1685_v34, %v1684_v46 }
 0x538   :  { %v1912_v23 = vpop.eup %1911  ;;  %v1513_v45 = vadd.f32 1.0, %v1910_v50 }
 0x539   :  { %1558 = vst [vmem:[#allocation2 + $0x20] sm:$0xff] %v1912_v23  ;;  %1921 = vpow2.f32 %v1613_v48  ;;  %v1435_v9 = vadd.f32 %v1686_v63, %v3244_v35  ;;  %v1687_v37 = vpop.f32.mrb[56].mxu0 }
 0x53a   :  { %1923 = vrcp.f32 %v1513_v45  ;;  %v1688_v21 = vpop.f32.mrb[57].mxu0 }
 0x53b   :  { %v1914_v57 = vpop.eup %1913  ;;  %v1614_v42 = vmul.f32 -1.442695, %v1435_v9  ;;  %v1689_v15 = vadd.f32 %v1688_v21, %v1687_v37 }
 0x53c   :  { %v1916_v31 = vpop.eup %1915  ;;  %v1514_v58 = vadd.f32 1.0, %v1914_v57 }
 0x53d   :  { %1559 = vst [vmem:[#allocation2 + $0x28] sm:$0xff] %v1916_v31  ;;  %1925 = vpow2.f32 %v1614_v42  ;;  %v1440_v30 = vadd.f32 %v1689_v15, %v3244_v35  ;;  %v1690_v33 = vpop.f32.mrb[58].mxu0 }
 0x53e   :  { %1927 = vrcp.f32 %v1514_v58  ;;  %v1691_v26 = vpop.f32.mrb[59].mxu0 }
 0x53f   :  { %v1918_v56 = vpop.eup %1917  ;;  %v1615_v10 = vmul.f32 -1.442695, %v1440_v30  ;;  %v1692_v28 = vadd.f32 %v1691_v26, %v1690_v33 }
 0x540   :  { %v1920_v32 = vpop.eup %1919  ;;  %v1515_v55 = vadd.f32 1.0, %v1918_v56 }
 0x541   :  { %1560 = vst [vmem:[#allocation2 + $0x30] sm:$0xff] %v1920_v32  ;;  %1929 = vpow2.f32 %v1615_v10  ;;  %v1445_v11 = vadd.f32 %v1692_v28, %v3244_v35  ;;  %v1693_v20 = vpop.f32.mrb[60].mxu0 }
 0x542   :  { %1931 = vrcp.f32 %v1515_v55  ;;  %v1694_v1 = vpop.f32.mrb[61].mxu0 }
 0x543   :  { %v1922_v0 = vpop.eup %1921  ;;  %v1616_v38 = vmul.f32 -1.442695, %v1445_v11  ;;  %v1695_v14 = vadd.f32 %v1694_v1, %v1693_v20 }
 0x544   :  { %v1924_v6 = vpop.eup %1923  ;;  %v1516_v29 = vadd.f32 1.0, %v1922_v0 }
 0x545   :  { %1561 = vst [vmem:[#allocation2 + $0x38] sm:$0xff] %v1924_v6  ;;  %1933 = vpow2.f32 %v1616_v38  ;;  %v1450_v16 = vadd.f32 %v1695_v14, %v3244_v35  ;;  %v1696_v12 = vpop.f32.mrb[32].mxu1 }
 0x546   :  { %1935 = vrcp.f32 %v1516_v29  ;;  %v1697_v40 = vpop.f32.mrb[33].mxu1 }
 0x547   :  { %v1926_v41 = vpop.eup %1925  ;;  %v1617_v3 = vmul.f32 -1.442695, %v1450_v16  ;;  %v1698_v7 = vadd.f32 %v1697_v40, %v1696_v12 }
 0x548   :  { %v1928_v51 = vpop.eup %1927  ;;  %v1517_v62 = vadd.f32 1.0, %v1926_v41 }
 0x549   :  { %1562 = vst [vmem:[#allocation2 + $0x40] sm:$0xff] %v1928_v51  ;;  %1937 = vpow2.f32 %v1617_v3  ;;  %v1455_v8 = vadd.f32 %v1698_v7, %v3244_v35 }
 0x54a   :  { %1939 = vrcp.f32 %v1517_v62 }
 0x54b   :  { %v1930_v4 = vpop.eup %1929  ;;  %v1618_v36 = vmul.f32 -1.442695, %v1455_v8 }
 0x54c   :  { %v1932_v25 = vpop.eup %1931  ;;  %v1518_v49 = vadd.f32 1.0, %v1930_v4 }
 0x54d   :  { %1563 = vst [vmem:[#allocation2 + $0x48] sm:$0xff] %v1932_v25  ;;  %1941 = vpow2.f32 %v1618_v36 }
 0x54e   :  { %1943 = vrcp.f32 %v1518_v49 }
 0x54f   :  { %v1934_v47 = vpop.eup %1933 }
 0x550   :  { %v1936_v61 = vpop.eup %1935  ;;  %v1519_v39 = vadd.f32 1.0, %v1934_v47 }
 0x551   :  { %1564 = vst [vmem:[#allocation2 + $0x50] sm:$0xff] %v1936_v61 }
 0x552   :  { %1945 = vrcp.f32 %v1519_v39 }
 0x553   :  { %v1938_v18 = vpop.eup %1937 }
 0x554   :  { %v1940_v5 = vpop.eup %1939  ;;  %v1520_v27 = vadd.f32 1.0, %v1938_v18 }
 0x555   :  { %1565 = vst [vmem:[#allocation2 + $0x58] sm:$0xff] %v1940_v5 }
 0x556   :  { %1947 = vrcp.f32 %v1520_v27 }
 0x557   :  { %v1942_v13 = vpop.eup %1941 }
 0x558   :  { %v1944_v35 = vpop.eup %1943  ;;  %v1521_v17 = vadd.f32 1.0, %v1942_v13 }
 0x559   :  { %1566 = vst [vmem:[#allocation2 + $0x60] sm:$0xff] %v1944_v35 }
 0x55a   :  { %1949 = vrcp.f32 %v1521_v17 }
 0x55c   :  { %v1946_v53 = vpop.eup %1945 }
 0x55d   :  { %1567 = vst [vmem:[#allocation2 + $0x68] sm:$0xff] %v1946_v53 }
 0x560   :  { %v1948_v22 = vpop.eup %1947 }
 0x561   :  { %1568 = vst [vmem:[#allocation2 + $0x70] sm:$0xff] %v1948_v22 }
 0x564   :  { %v1950_v19 = vpop.eup %1949 }
 0x565   :  { %1569 = vst [vmem:[#allocation2 + $0x78] sm:$0xff] %v1950_v19 }
 0x566   :  { %1574 = vsyncadd [#allocation3], 1920  ;;  %s1976_s10 = smov [#allocation2]  }
 0x567   :  { %s1575_s18 = sshll.u32 %s1976_s10, 4  ;;  %s1576_s18 = int_to_ptr.vmem [resolvable:$true] %s1575_s18 }
 0x568   :  { %s1951_s19 = scalar_lea.vmem %s1576_s18, 128  ;;  %s1955_s20 = scalar_lea.vmem %s1576_s18, 2048 }
 0x569   :  { %p1952_p0 = scmp.ne.s32.totalorder %s1576_s18, %s1951_s19  ;;  %p1956_p1 = scmp.lt.s32.totalorder %s1576_s18, %s1576_s18 }
 0x56a   :  { %p1957_p2 = scmp.lt.s32.totalorder %s1955_s20, %s1951_s19 }
 0x56c   :  { %p1958_p3 = por %p1957_p2, %p1956_p1 }
 0x56e   :  { %p1959_p4 = pnand %p1958_p3, %p1952_p0 }
 0x570   :  { %1962 = shalt.err (!%p1959_p4)
}
 0x571   :  { %s1963_s5 = scalar_lea.hbm %s3285_s11, 128 }
 0x572   :  { %p1964_p5 = scmp.ne.s32.totalorder %s3285_s11, %s1963_s5  ;;  %p1967_p6 = scmp.lt.u32.totalorder %s1963_s5, %s3285_s11 }
 0x574   :  { %p1969_p7 = pnand %p1967_p6, %p1964_p5 }
 0x576   :  { %1972 = shalt.err (!%p1969_p7)
}
 0x577   :  { %s1977_s4 = smov 128   ;;  %s1978_s6 = smov 8  }
 0x578   :  { %1581 = dma.vmem_to_hbm [thread:$0]  %s1576_s18, 128, %s3285_s11, [#allocation3], %s1977_s4, %s1977_s4, %s1978_s6  }
 0x579   :  { %1973 = dma.done.wait [#allocation3], 2048  }
 0x57a   :  { %1974 = vsyncadd [#allocation3], 4294965248 }
 0x57b   :  { %1585 = vsyncpa [#allocation3], 1 }

</bundles_post_ra>
